<compile_context>
chip_gen: v6e
topology: v6e:2x2x1
jax: 0.10.0
libtpu: 0.0.40
codegen_flags: <defaults>
</compile_context>

<pallas_src>
import numpy as np
import jax
import jax.numpy as jnp
from jax.experimental import pallas as pl
from jax.experimental.pallas import tpu as pltpu


# ----------------------------------------------------------------------------
# In-kernel math helpers
# ----------------------------------------------------------------------------
def _erf(x):
    # Abramowitz & Stegun 7.1.26 rational approximation, |err| < 1.5e-7
    # (fp32-exact vs. torch's erf-GELU within the 1e-4 test tolerance).
    a1, a2, a3, a4, a5 = 0.254829592, -0.284496736, 1.421413741, -1.453152027, 1.061405429
    p = 0.3275911
    s = jnp.where(x < 0.0, -1.0, 1.0)
    ax = jnp.abs(x)
    t = 1.0 / (1.0 + p * ax)
    poly = ((((a5 * t + a4) * t + a3) * t + a2) * t + a1) * t
    return s * (1.0 - poly * jnp.exp(-ax * ax))


def _gelu_exact(x):
    # nn.GELU() default (exact, erf based).
    return 0.5 * x * (1.0 + _erf(x * 0.7071067811865476))


def _gelu_tanh(x):
    # tanh-form GELU: one EUP tanh + short FMA chain (VALU-relief fast path).
    # Deviates from exact-erf GELU by up to ~1e-3*|x| -> kept off the test path.
    c = 0.7978845608028654  # sqrt(2/pi)
    return 0.5 * x * (1.0 + jnp.tanh(c * (x + 0.044715 * (x * x * x))))


# ----------------------------------------------------------------------------
# Pallas kernels
# ----------------------------------------------------------------------------
def _make_fused_decoder_kernel(approx_gelu=False):
    """Fused: deconv1(2x2,s2) -> LayerNorm2d -> GELU -> (deconv2 o 1x1 conv).

    x_ref : (tm, td)        input tokens (one per input pixel)
    w1_ref: (td, 4*c1)      deconv1 weights, columns ordered (kh, kw, c1)
    b1_ref: (1, 4*c1)       deconv1 bias tiled per sub-pixel
    g_ref, beta_ref: (1, c1) LayerNorm2d affine params
    wc_ref: (c1, 4*K_pad)   combined deconv2@1x1 weights, cols (kh', kw', K_pad)
    bc_ref: (1, 4*K_pad)    combined bias tiled per sub-sub-pixel
    o_ref : (tm, 16*K_pad)  per-token 4x4 spatial block of K_pad logits,
                            ordered (kh, kw, kh', kw', K_pad); 16*K_pad is a
                            multiple of 128 -> one unmasked lane-dense store.
    """
    gelu = _gelu_tanh if approx_gelu else _gelu_exact

    def kernel(x_ref, w1_ref, b1_ref, g_ref, beta_ref, wc_ref, bc_ref, o_ref):
        c1 = g_ref.shape[1]
        # Loop-invariant reads hoisted out of the sub-pixel loop (no CSE in JAX).
        g = g_ref[...]
        beta = beta_ref[...]
        wc = wc_ref[...]
        bc = bc_ref[...]
        cdt = wc.dtype

        y = jnp.dot(x_ref[...], w1_ref[...],
                    preferred_element_type=jnp.float32) + b1_ref[...]

        outs = []
        for j in range(4):                       # sub-pixel (kh, kw), j = 2*kh + kw
            yj = y[:, j * c1:(j + 1) * c1]       # (tm, c1)
            u = jnp.mean(yj, axis=-1, keepdims=True)
            d = yj - u
            var = jnp.mean(d * d, axis=-1, keepdims=True)
            hj = (d * jax.lax.rsqrt(var + 1e-6)) * g + beta
            hj = gelu(hj)
            outs.append(jnp.dot(hj.astype(cdt), wc,
                                preferred_element_type=jnp.float32) + bc)
        # Single lane-dense (multiple-of-128) store per row tile.
        o_ref[...] = jnp.concatenate(outs, axis=-1)

    return kernel


def _bilinear_kernel(x_ref, rh_ref, rwT_ref, o_ref):
    # out = Rh_strip @ X @ Rw^T_strip   (separable bilinear, align_corners=False)
    t = jnp.dot(rh_ref[...], x_ref[...], preferred_element_type=jnp.float32)
    o_ref[...] = jnp.dot(t, rwT_ref[...], preferred_element_type=jnp.float32)


# ----------------------------------------------------------------------------
# Tiling helpers
# ----------------------------------------------------------------------------
def _row_tile(n, cap=1024, min_steps=1):
    """Largest power-of-two row tile <= cap (and, if min_steps > 1, small enough
    that the grid has at least min_steps steps) dividing n; else a pad-friendly
    multiple-of-8 tile."""
    if min_steps > 1:
        cap = min(cap, max(8, (((n + min_steps - 1) // min_steps) + 7) // 8 * 8))
    for t in (1024, 512, 256, 128, 64, 32, 16, 8):
        if t <= cap and n % t == 0:
            return t
    return min(cap, ((n + 7) // 8) * 8)


def _pad_rows(x, tm):
    n = x.shape[0]
    pad = (-n) % tm
    if pad:
        x = jnp.pad(x, ((0, pad),) + ((0, 0),) * (x.ndim - 1))
    return x, pad


def _default_h_strip():
    # v7x halves VMEM (64 MiB physical / 32 MiB scoped) -> keep the Hout strip
    # at 256 there; v5e/v6e (128 MiB) take 512 to amortize per-step overhead
    # and the repeated rh-strip DMA.
    try:
        kind = jax.devices()[0].device_kind.lower()
    except Exception:
        kind = ""
    return 256 if "v7" in kind else 512


# ----------------------------------------------------------------------------
# Pallas call wrappers
# ----------------------------------------------------------------------------
def fused_decoder(x_tok, w1r, b1r, g, beta, wc, bc, *,
                  use_bf16=False, approx_gelu=False):
    n, td = x_tok.shape
    c1 = g.shape[1]
    ko4 = wc.shape[1]        # 4*K_pad
    cout = 4 * ko4           # 16*K_pad (multiple of 128 lanes)
    tm = _row_tile(n, cap=1024, min_steps=4)   # grid >= 4 steps (v7x megacore)

    if use_bf16:
        # MXU-native operands on v6e/v7x; halves the dominant x_tok HBM stream
        # on v5e.  Accumulation stays f32 via preferred_element_type.
        x_tok = x_tok.astype(jnp.bfloat16)
        w1r = w1r.astype(jnp.bfloat16)
        wc = wc.astype(jnp.bfloat16)

    x_p, pad = _pad_rows(x_tok, tm)
    np_ = n + pad

    out = pl.pallas_call(
        _make_fused_decoder_kernel(approx_gelu),
        out_shape=jax.ShapeDtypeStruct((np_, cout), jnp.float32),
        grid=(np_ // tm,),
        in_specs=[pl.BlockSpec((tm, td), lambda i: (i, 0)),
                  pl.BlockSpec((td, 4 * c1), lambda i: (0, 0)),
                  pl.BlockSpec((1, 4 * c1), lambda i: (0, 0)),
                  pl.BlockSpec((1, c1), lambda i: (0, 0)),
                  pl.BlockSpec((1, c1), lambda i: (0, 0)),
                  pl.BlockSpec((c1, ko4), lambda i: (0, 0)),
                  pl.BlockSpec((1, ko4), lambda i: (0, 0))],
        out_specs=pl.BlockSpec((tm, cout), lambda i: (i, 0)),
        compiler_params=pltpu.CompilerParams(dimension_semantics=("parallel",)),
    )(x_p, w1r, b1r, g, beta, wc, bc)
    return out[:n] if pad else out


def bilinear_resize(planes, rh, rwT, *, h_cap=None, w_cap=1024):
    """planes: (P, Hin, Win) -> (P, Hout, Wout) via Rh @ X @ Rw^T, tiled over
    (plane, Hout strip, Wout strip).  Output block is lane-dense."""
    n, hin, win = planes.shape
    hout, wout = rh.shape[0], rwT.shape[1]
    if h_cap is None:
        h_cap = _default_h_strip()

    th = _row_tile(hout, cap=h_cap)
    rh_p, hpad = _pad_rows(rh, th)
    hpadd = hout + hpad

    # Tile Wout only when huge; keeps rwT slab + double-buffered output strip
    # well under v7x's 32 MiB scoped VMEM while staying a multiple of 128 lanes.
    if wout > w_cap:
        tw = w_cap
        wpad = (-wout) % tw
        rwT_p = jnp.pad(rwT, ((0, 0), (0, wpad))) if wpad else rwT
    else:
        tw, wpad, rwT_p = wout, 0, rwT
    wpadd = wout + wpad

    out = pl.pallas_call(
        _bilinear_kernel,
        out_shape=jax.ShapeDtypeStruct((n, hpadd, wpadd), jnp.float32),
        grid=(n, hpadd // th, wpadd // tw),
        in_specs=[pl.BlockSpec((None, hin, win), lambda p, h, w: (p, 0, 0)),
                  pl.BlockSpec((th, hin), lambda p, h, w: (h, 0)),
                  pl.BlockSpec((win, tw), lambda p, h, w: (0, w))],
        out_specs=pl.BlockSpec((None, th, tw), lambda p, h, w: (p, h, w)),
        compiler_params=pltpu.CompilerParams(
            dimension_semantics=("parallel", "parallel", "parallel")),
    )(planes, rh_p, rwT_p)
    if hpad or wpad:
        out = out[:, :hout, :wout]
    return out


# ----------------------------------------------------------------------------
# PyTorch-equivalent bilinear (align_corners=False) interpolation matrices
# ----------------------------------------------------------------------------
def _interp_matrix(out_size, in_size):
    o = np.arange(out_size, dtype=np.float64)
    src = (o + 0.5) * (in_size / out_size) - 0.5
    src = np.maximum(src, 0.0)
    i0 = np.minimum(np.floor(src).astype(np.int64), in_size - 1)
    i1 = np.minimum(i0 + 1, in_size - 1)
    w1 = src - i0
    w0 = 1.0 - w1
    r = np.zeros((out_size, in_size), dtype=np.float32)
    r[np.arange(out_size), i0] += w0
    r[np.arange(out_size), i1] += w1
    return jnp.asarray(r)


# ----------------------------------------------------------------------------
# MaskDecoder parameters (deterministic synthetic init, matching module shapes)
# ----------------------------------------------------------------------------
def init_mask_decoder_params(key, transformer_dim, num_fg_classes):
    td = transformer_dim
    c1, c2 = td // 4, td // 8
    ks = jax.random.split(key, 6)
    sc = 0.1
    return dict(
        # ConvTranspose2d(td, td//4, kernel=2, stride=2): weight (Cin, Cout, 2, 2)
        w1=jax.random.normal(ks[0], (td, c1, 2, 2), jnp.float32) * sc,
        b1=jax.random.normal(ks[1], (c1,), jnp.float32) * sc,
        # LayerNorm2d(td//4): torch init = ones / zeros
        g=jnp.ones((c1,), jnp.float32),
        beta=jnp.zeros((c1,), jnp.float32),
        # ConvTranspose2d(td//4, td//8, kernel=2, stride=2)
        w2=jax.random.normal(ks[2], (c1, c2, 2, 2), jnp.float32) * sc,
        b2=jax.random.normal(ks[3], (c2,), jnp.float32) * sc,
        # Conv2d(td//8, num_fg_classes, kernel=1): weight (K, Cin, 1, 1)
        w3=jax.random.normal(ks[4], (num_fg_classes, c2, 1, 1), jnp.float32) * sc,
        b3=jax.random.normal(ks[5], (num_fg_classes,), jnp.float32) * sc,
    )


# ----------------------------------------------------------------------------
# Forward pass (Pallas)
# ----------------------------------------------------------------------------
def mask_decoder_forward(params, image_embeddings, original_size,
                         *, use_bf16=False, approx_gelu=False):
    # image_embeddings: (B, transformer_dim, H, W) NCHW, as in PyTorch.
    B, td, H, W = image_embeddings.shape
    c1, c2 = td // 4, td // 8
    K = params["w3"].shape[0]
    Kp = ((K + 7) // 8) * 8            # pad so 16*Kp is a multiple of 128 lanes

    # --- weight packing (host/XLA side, tiny) ---
    # deconv1: (Cin, Cout, kh, kw) -> (Cin, kh*kw*Cout)
    w1r = jnp.transpose(params["w1"], (0, 2, 3, 1)).reshape(td, 4 * c1)
    b1r = jnp.tile(params["b1"], 4)[None, :]
    # fold 1x1 conv (c2 -> K) into deconv2:  Wc[:, (kh',kw',k)] = W2[:,:,kh',kw'] @ W3^T
    w3r = params["w3"].reshape(K, c2)                                   # (K, c2)
    wc4 = jnp.einsum("cokl,no->ckln", params["w2"], w3r)                # (c1,2,2,K)
    wc4 = jnp.pad(wc4, ((0, 0), (0, 0), (0, 0), (0, Kp - K)))           # zero channels
    wc = wc4.reshape(c1, 4 * Kp)
    bc = params["b2"] @ w3r.T + params["b3"]                            # (K,)
    bc = jnp.pad(bc, (0, Kp - K))
    bcr = jnp.tile(bc, 4)[None, :]                                      # (1, 4*Kp)

    # --- fused deconv1 + LN2d + GELU + (deconv2 o 1x1 conv) ---
    x_tok = jnp.transpose(image_embeddings, (0, 2, 3, 1)).reshape(B * H * W, td)
    y = fused_decoder(x_tok, w1r, b1r,
                      params["g"][None, :], params["beta"][None, :],
                      wc, bcr, use_bf16=use_bf16, approx_gelu=approx_gelu)  # (BHW, 16*Kp)

    # --- pixel shuffle to (B*K, 4H, 4W) mask-logit planes ---
    # token channel order is (kh, kw, kh', kw', Kp); row = 4i+2kh+kh', col = 4j+2kw+kw'
    y = y.reshape(B, H, W, 2, 2, 2, 2, Kp)[..., :K]        # drop lane padding
    y = jnp.transpose(y, (0, 7, 1, 3, 5, 2, 4, 6))          # (B,K,i,kh,kh',j,kw,kw')
    planes = y.reshape(B * K, 4 * H, 4 * W)

    # --- bilinear upsample (align_corners=False) to original_size ---
    Hout, Wout = original_size
    rh = _interp_matrix(Hout, 4 * H)
    rw = _interp_matrix(Wout, 4 * W)
    out = bilinear_resize(planes, rh, rw.T).reshape(B, K, Hout, Wout)
    return out                                                           # NCHW, like PyTorch


# ----------------------------------------------------------------------------
# Pure-JAX reference (for correctness check)
# ----------------------------------------------------------------------------
def _deconv2x2_ref(x, w, b):
    B, Cin, H, W = x.shape
    Cout = w.shape[1]
    y = jnp.einsum("bchw,cokl->bohkwl", x, w)
    return y.reshape(B, Cout, 2 * H, 2 * W) + b[None, :, None, None]


def _layernorm2d_ref(x, g, beta, eps=1e-6):
    u = x.mean(axis=1, keepdims=True)
    d = x - u
    s = (d * d).mean(axis=1, keepdims=True)
    return (d / jnp.sqrt(s + eps)) * g[None, :, None, None] + beta[None, :, None, None]


def reference_forward(params, x, original_size):
    from jax.scipy.special import erf
    y = _deconv2x2_ref(x, params["w1"], params["b1"])
    y = _layernorm2d_ref(y, params["g"], params["beta"])
    y = 0.5 * y * (1.0 + erf(y / jnp.sqrt(2.0)))
    y = _deconv2x2_ref(y, params["w2"], params["b2"])
    y = jnp.einsum("bchw,kc->bkhw", y, params["w3"][:, :, 0, 0]) + params["b3"][None, :, None, None]
    rh = _interp_matrix(original_size[0], y.shape[2])
    rw = _interp_matrix(original_size[1], y.shape[3])
    return jnp.einsum("oh,bkhw,pw->bkop", rh, y, rw)


# ----------------------------------------------------------------------------
if __name__ == "__main__":
    key = jax.random.PRNGKey(0)
    kp, kx = jax.random.split(key)

    transformer_dim = 32
    num_fg_classes = 2
    B, H, W = 2, 8, 8
    original_size = (64, 64)

    params = init_mask_decoder_params(kp, transformer_dim, num_fg_classes)
    image_embeddings = jax.random.normal(kx, (B, transformer_dim, H, W), jnp.float32)

    out = mask_decoder_forward(params, image_embeddings, original_size)
    out = jax.block_until_ready(out)

    assert out.shape == (B, num_fg_classes, original_size[0], original_size[1]), out.shape

    ref = reference_forward(params, image_embeddings, original_size)
    np.testing.assert_allclose(np.asarray(out), np.asarray(ref), atol=1e-4, rtol=1e-4)

    print("KERNEL_OK")
</pallas_src>

<mosaic_0001>
module attributes {stable_mosaic.version = 11 : i64} {
  func.func @kernel(%arg0: i32, %arg1: memref<32x32xf32, #tpu.memory_space<vmem>>, %arg2: memref<32x32xf32, #tpu.memory_space<vmem>>, %arg3: memref<1x32xf32, #tpu.memory_space<vmem>>, %arg4: memref<1x8xf32, #tpu.memory_space<vmem>>, %arg5: memref<1x8xf32, #tpu.memory_space<vmem>>, %arg6: memref<8x32xf32, #tpu.memory_space<vmem>>, %arg7: memref<1x32xf32, #tpu.memory_space<vmem>>, %arg8: memref<32x128xf32, #tpu.memory_space<vmem>>) attributes {dimension_semantics = [#tpu.dimension_semantics<parallel>], iteration_bounds = array<i64: 4>, scalar_prefetch = 0 : i64, scratch_operands = 0 : i64, tpu.core_type = #tpu.core_type<tc>, window_params = [{transform_indices = @transform_0, window_bounds = array<i64: 32, 32>}, {pipeline_mode = #tpu.pipeline_mode<synchronous>, transform_indices = @transform_1, window_bounds = array<i64: 32, 32>}, {pipeline_mode = #tpu.pipeline_mode<synchronous>, transform_indices = @transform_2, window_bounds = array<i64: 1, 32>}, {pipeline_mode = #tpu.pipeline_mode<synchronous>, transform_indices = @transform_3, window_bounds = array<i64: 1, 8>}, {pipeline_mode = #tpu.pipeline_mode<synchronous>, transform_indices = @transform_4, window_bounds = array<i64: 1, 8>}, {pipeline_mode = #tpu.pipeline_mode<synchronous>, transform_indices = @transform_5, window_bounds = array<i64: 8, 32>}, {pipeline_mode = #tpu.pipeline_mode<synchronous>, transform_indices = @transform_6, window_bounds = array<i64: 1, 32>}, {transform_indices = @transform_7, window_bounds = array<i64: 32, 128>}]} {
    %c0 = arith.constant 0 : index
    %c0_0 = arith.constant 0 : index
    %0 = vector.load %arg4[%c0, %c0_0] : memref<1x8xf32, #tpu.memory_space<vmem>>, vector<1x8xf32>
    %c0_1 = arith.constant 0 : index
    %c0_2 = arith.constant 0 : index
    %1 = vector.load %arg5[%c0_1, %c0_2] : memref<1x8xf32, #tpu.memory_space<vmem>>, vector<1x8xf32>
    %c0_3 = arith.constant 0 : index
    %c0_4 = arith.constant 0 : index
    %2 = vector.load %arg6[%c0_3, %c0_4] : memref<8x32xf32, #tpu.memory_space<vmem>>, vector<8x32xf32>
    %c0_5 = arith.constant 0 : index
    %c0_6 = arith.constant 0 : index
    %3 = vector.load %arg7[%c0_5, %c0_6] : memref<1x32xf32, #tpu.memory_space<vmem>>, vector<1x32xf32>
    %c0_7 = arith.constant 0 : index
    %c0_8 = arith.constant 0 : index
    %4 = vector.load %arg1[%c0_7, %c0_8] : memref<32x32xf32, #tpu.memory_space<vmem>>, vector<32x32xf32>
    %c0_9 = arith.constant 0 : index
    %c0_10 = arith.constant 0 : index
    %5 = vector.load %arg2[%c0_9, %c0_10] : memref<32x32xf32, #tpu.memory_space<vmem>>, vector<32x32xf32>
    %cst = arith.constant dense<0.000000e+00> : vector<32x32xf32>
    %6 = tpu.matmul %4, %5, %cst {dimension_numbers = #tpu.dot_dimension_numbers<[1], [0], [0], [1], [0, 0, 1, 1], [], []>} : vector<32x32xf32>, vector<32x32xf32>, vector<32x32xf32> -> vector<32x32xf32>
    %c0_11 = arith.constant 0 : index
    %c0_12 = arith.constant 0 : index
    %7 = vector.load %arg3[%c0_11, %c0_12] : memref<1x32xf32, #tpu.memory_space<vmem>>, vector<1x32xf32>
    %8 = vector.broadcast %7 : vector<1x32xf32> to vector<32x32xf32>
    %9 = arith.addf %6, %8 : vector<32x32xf32>
    %10 = vector.extract_strided_slice %9 {offsets = [0, 0], sizes = [32, 8], strides = [1, 1]} : vector<32x32xf32> to vector<32x8xf32>
    %cst_13 = arith.constant dense<0.000000e+00> : vector<32xf32>
    %11 = vector.multi_reduction <add>, %10, %cst_13 [1] : vector<32x8xf32> to vector<32xf32>
    %12 = vector.shape_cast %11 : vector<32xf32> to vector<32x1xf32>
    %cst_14 = arith.constant 8.000000e+00 : f32
    %13 = vector.broadcast %cst_14 : f32 to vector<32x1xf32>
    %14 = arith.divf %12, %13 : vector<32x1xf32>
    %15 = vector.broadcast %14 : vector<32x1xf32> to vector<32x8xf32>
    %16 = arith.subf %10, %15 : vector<32x8xf32>
    %17 = arith.mulf %16, %16 : vector<32x8xf32>
    %cst_15 = arith.constant dense<0.000000e+00> : vector<32xf32>
    %18 = vector.multi_reduction <add>, %17, %cst_15 [1] : vector<32x8xf32> to vector<32xf32>
    %19 = vector.shape_cast %18 : vector<32xf32> to vector<32x1xf32>
    %cst_16 = arith.constant 8.000000e+00 : f32
    %20 = vector.broadcast %cst_16 : f32 to vector<32x1xf32>
    %21 = arith.divf %19, %20 : vector<32x1xf32>
    %cst_17 = arith.constant 9.99999997E-7 : f32
    %22 = vector.broadcast %cst_17 : f32 to vector<32x1xf32>
    %23 = arith.addf %21, %22 : vector<32x1xf32>
    %24 = math.rsqrt %23 : vector<32x1xf32>
    %25 = vector.broadcast %24 : vector<32x1xf32> to vector<32x8xf32>
    %26 = arith.mulf %16, %25 : vector<32x8xf32>
    %27 = vector.broadcast %0 : vector<1x8xf32> to vector<32x8xf32>
    %28 = arith.mulf %26, %27 : vector<32x8xf32>
    %29 = vector.broadcast %1 : vector<1x8xf32> to vector<32x8xf32>
    %30 = arith.addf %28, %29 : vector<32x8xf32>
    %cst_18 = arith.constant 5.000000e-01 : f32
    %31 = vector.broadcast %cst_18 : f32 to vector<32x8xf32>
    %32 = arith.mulf %31, %30 : vector<32x8xf32>
    %cst_19 = arith.constant 0.707106769 : f32
    %33 = vector.broadcast %cst_19 : f32 to vector<32x8xf32>
    %34 = arith.mulf %30, %33 : vector<32x8xf32>
    %cst_20 = arith.constant 0.000000e+00 : f32
    %35 = vector.broadcast %cst_20 : f32 to vector<32x8xf32>
    %36 = arith.cmpf olt, %34, %35 : vector<32x8xf32>
    %cst_21 = arith.constant -1.000000e+00 : f32
    %cst_22 = arith.constant 1.000000e+00 : f32
    %37 = vector.broadcast %cst_21 : f32 to vector<32x8xf32>
    %38 = vector.broadcast %cst_22 : f32 to vector<32x8xf32>
    %39 = arith.select %36, %37, %38 : vector<32x8xi1>, vector<32x8xf32>
    %40 = math.absf %34 : vector<32x8xf32>
    %cst_23 = arith.constant 0.327591091 : f32
    %41 = vector.broadcast %cst_23 : f32 to vector<32x8xf32>
    %42 = arith.mulf %41, %40 : vector<32x8xf32>
    %cst_24 = arith.constant 1.000000e+00 : f32
    %43 = vector.broadcast %cst_24 : f32 to vector<32x8xf32>
    %44 = arith.addf %43, %42 : vector<32x8xf32>
    %cst_25 = arith.constant 1.000000e+00 : f32
    %45 = vector.broadcast %cst_25 : f32 to vector<32x8xf32>
    %46 = arith.divf %45, %44 : vector<32x8xf32>
    %cst_26 = arith.constant 1.06140542 : f32
    %47 = vector.broadcast %cst_26 : f32 to vector<32x8xf32>
    %48 = arith.mulf %47, %46 : vector<32x8xf32>
    %cst_27 = arith.constant -1.45315206 : f32
    %49 = vector.broadcast %cst_27 : f32 to vector<32x8xf32>
    %50 = arith.addf %48, %49 : vector<32x8xf32>
    %51 = arith.mulf %50, %46 : vector<32x8xf32>
    %cst_28 = arith.constant 1.42141378 : f32
    %52 = vector.broadcast %cst_28 : f32 to vector<32x8xf32>
    %53 = arith.addf %51, %52 : vector<32x8xf32>
    %54 = arith.mulf %53, %46 : vector<32x8xf32>
    %cst_29 = arith.constant -0.284496725 : f32
    %55 = vector.broadcast %cst_29 : f32 to vector<32x8xf32>
    %56 = arith.addf %54, %55 : vector<32x8xf32>
    %57 = arith.mulf %56, %46 : vector<32x8xf32>
    %cst_30 = arith.constant 0.254829586 : f32
    %58 = vector.broadcast %cst_30 : f32 to vector<32x8xf32>
    %59 = arith.addf %57, %58 : vector<32x8xf32>
    %60 = arith.mulf %59, %46 : vector<32x8xf32>
    %cst_31 = arith.constant 0.000000e+00 : f32
    %61 = vector.broadcast %cst_31 : f32 to vector<32x8xf32>
    %62 = arith.subf %61, %40 : vector<32x8xf32>
    %63 = arith.mulf %62, %40 : vector<32x8xf32>
    %64 = math.exp %63 : vector<32x8xf32>
    %65 = arith.mulf %60, %64 : vector<32x8xf32>
    %cst_32 = arith.constant 1.000000e+00 : f32
    %66 = vector.broadcast %cst_32 : f32 to vector<32x8xf32>
    %67 = arith.subf %66, %65 : vector<32x8xf32>
    %68 = arith.mulf %39, %67 : vector<32x8xf32>
    %cst_33 = arith.constant 1.000000e+00 : f32
    %69 = vector.broadcast %cst_33 : f32 to vector<32x8xf32>
    %70 = arith.addf %69, %68 : vector<32x8xf32>
    %71 = arith.mulf %32, %70 : vector<32x8xf32>
    %cst_34 = arith.constant dense<0.000000e+00> : vector<32x32xf32>
    %72 = tpu.matmul %71, %2, %cst_34 {dimension_numbers = #tpu.dot_dimension_numbers<[1], [0], [0], [1], [0, 0, 1, 1], [], []>} : vector<32x8xf32>, vector<8x32xf32>, vector<32x32xf32> -> vector<32x32xf32>
    %73 = vector.broadcast %3 : vector<1x32xf32> to vector<32x32xf32>
    %74 = arith.addf %72, %73 : vector<32x32xf32>
    %75 = vector.extract_strided_slice %9 {offsets = [0, 8], sizes = [32, 8], strides = [1, 1]} : vector<32x32xf32> to vector<32x8xf32>
    %cst_35 = arith.constant dense<0.000000e+00> : vector<32xf32>
    %76 = vector.multi_reduction <add>, %75, %cst_35 [1] : vector<32x8xf32> to vector<32xf32>
    %77 = vector.shape_cast %76 : vector<32xf32> to vector<32x1xf32>
    %cst_36 = arith.constant 8.000000e+00 : f32
    %78 = vector.broadcast %cst_36 : f32 to vector<32x1xf32>
    %79 = arith.divf %77, %78 : vector<32x1xf32>
    %80 = vector.broadcast %79 : vector<32x1xf32> to vector<32x8xf32>
    %81 = arith.subf %75, %80 : vector<32x8xf32>
    %82 = arith.mulf %81, %81 : vector<32x8xf32>
    %cst_37 = arith.constant dense<0.000000e+00> : vector<32xf32>
    %83 = vector.multi_reduction <add>, %82, %cst_37 [1] : vector<32x8xf32> to vector<32xf32>
    %84 = vector.shape_cast %83 : vector<32xf32> to vector<32x1xf32>
    %cst_38 = arith.constant 8.000000e+00 : f32
    %85 = vector.broadcast %cst_38 : f32 to vector<32x1xf32>
    %86 = arith.divf %84, %85 : vector<32x1xf32>
    %cst_39 = arith.constant 9.99999997E-7 : f32
    %87 = vector.broadcast %cst_39 : f32 to vector<32x1xf32>
    %88 = arith.addf %86, %87 : vector<32x1xf32>
    %89 = math.rsqrt %88 : vector<32x1xf32>
    %90 = vector.broadcast %89 : vector<32x1xf32> to vector<32x8xf32>
    %91 = arith.mulf %81, %90 : vector<32x8xf32>
    %92 = vector.broadcast %0 : vector<1x8xf32> to vector<32x8xf32>
    %93 = arith.mulf %91, %92 : vector<32x8xf32>
    %94 = vector.broadcast %1 : vector<1x8xf32> to vector<32x8xf32>
    %95 = arith.addf %93, %94 : vector<32x8xf32>
    %cst_40 = arith.constant 5.000000e-01 : f32
    %96 = vector.broadcast %cst_40 : f32 to vector<32x8xf32>
    %97 = arith.mulf %96, %95 : vector<32x8xf32>
    %cst_41 = arith.constant 0.707106769 : f32
    %98 = vector.broadcast %cst_41 : f32 to vector<32x8xf32>
    %99 = arith.mulf %95, %98 : vector<32x8xf32>
    %cst_42 = arith.constant 0.000000e+00 : f32
    %100 = vector.broadcast %cst_42 : f32 to vector<32x8xf32>
    %101 = arith.cmpf olt, %99, %100 : vector<32x8xf32>
    %cst_43 = arith.constant -1.000000e+00 : f32
    %cst_44 = arith.constant 1.000000e+00 : f32
    %102 = vector.broadcast %cst_43 : f32 to vector<32x8xf32>
    %103 = vector.broadcast %cst_44 : f32 to vector<32x8xf32>
    %104 = arith.select %101, %102, %103 : vector<32x8xi1>, vector<32x8xf32>
    %105 = math.absf %99 : vector<32x8xf32>
    %cst_45 = arith.constant 0.327591091 : f32
    %106 = vector.broadcast %cst_45 : f32 to vector<32x8xf32>
    %107 = arith.mulf %106, %105 : vector<32x8xf32>
    %cst_46 = arith.constant 1.000000e+00 : f32
    %108 = vector.broadcast %cst_46 : f32 to vector<32x8xf32>
    %109 = arith.addf %108, %107 : vector<32x8xf32>
    %cst_47 = arith.constant 1.000000e+00 : f32
    %110 = vector.broadcast %cst_47 : f32 to vector<32x8xf32>
    %111 = arith.divf %110, %109 : vector<32x8xf32>
    %cst_48 = arith.constant 1.06140542 : f32
    %112 = vector.broadcast %cst_48 : f32 to vector<32x8xf32>
    %113 = arith.mulf %112, %111 : vector<32x8xf32>
    %cst_49 = arith.constant -1.45315206 : f32
    %114 = vector.broadcast %cst_49 : f32 to vector<32x8xf32>
    %115 = arith.addf %113, %114 : vector<32x8xf32>
    %116 = arith.mulf %115, %111 : vector<32x8xf32>
    %cst_50 = arith.constant 1.42141378 : f32
    %117 = vector.broadcast %cst_50 : f32 to vector<32x8xf32>
    %118 = arith.addf %116, %117 : vector<32x8xf32>
    %119 = arith.mulf %118, %111 : vector<32x8xf32>
    %cst_51 = arith.constant -0.284496725 : f32
    %120 = vector.broadcast %cst_51 : f32 to vector<32x8xf32>
    %121 = arith.addf %119, %120 : vector<32x8xf32>
    %122 = arith.mulf %121, %111 : vector<32x8xf32>
    %cst_52 = arith.constant 0.254829586 : f32
    %123 = vector.broadcast %cst_52 : f32 to vector<32x8xf32>
    %124 = arith.addf %122, %123 : vector<32x8xf32>
    %125 = arith.mulf %124, %111 : vector<32x8xf32>
    %cst_53 = arith.constant 0.000000e+00 : f32
    %126 = vector.broadcast %cst_53 : f32 to vector<32x8xf32>
    %127 = arith.subf %126, %105 : vector<32x8xf32>
    %128 = arith.mulf %127, %105 : vector<32x8xf32>
    %129 = math.exp %128 : vector<32x8xf32>
    %130 = arith.mulf %125, %129 : vector<32x8xf32>
    %cst_54 = arith.constant 1.000000e+00 : f32
    %131 = vector.broadcast %cst_54 : f32 to vector<32x8xf32>
    %132 = arith.subf %131, %130 : vector<32x8xf32>
    %133 = arith.mulf %104, %132 : vector<32x8xf32>
    %cst_55 = arith.constant 1.000000e+00 : f32
    %134 = vector.broadcast %cst_55 : f32 to vector<32x8xf32>
    %135 = arith.addf %134, %133 : vector<32x8xf32>
    %136 = arith.mulf %97, %135 : vector<32x8xf32>
    %cst_56 = arith.constant dense<0.000000e+00> : vector<32x32xf32>
    %137 = tpu.matmul %136, %2, %cst_56 {dimension_numbers = #tpu.dot_dimension_numbers<[1], [0], [0], [1], [0, 0, 1, 1], [], []>} : vector<32x8xf32>, vector<8x32xf32>, vector<32x32xf32> -> vector<32x32xf32>
    %138 = vector.broadcast %3 : vector<1x32xf32> to vector<32x32xf32>
    %139 = arith.addf %137, %138 : vector<32x32xf32>
    %140 = vector.extract_strided_slice %9 {offsets = [0, 16], sizes = [32, 8], strides = [1, 1]} : vector<32x32xf32> to vector<32x8xf32>
    %cst_57 = arith.constant dense<0.000000e+00> : vector<32xf32>
    %141 = vector.multi_reduction <add>, %140, %cst_57 [1] : vector<32x8xf32> to vector<32xf32>
    %142 = vector.shape_cast %141 : vector<32xf32> to vector<32x1xf32>
    %cst_58 = arith.constant 8.000000e+00 : f32
    %143 = vector.broadcast %cst_58 : f32 to vector<32x1xf32>
    %144 = arith.divf %142, %143 : vector<32x1xf32>
    %145 = vector.broadcast %144 : vector<32x1xf32> to vector<32x8xf32>
    %146 = arith.subf %140, %145 : vector<32x8xf32>
    %147 = arith.mulf %146, %146 : vector<32x8xf32>
    %cst_59 = arith.constant dense<0.000000e+00> : vector<32xf32>
    %148 = vector.multi_reduction <add>, %147, %cst_59 [1] : vector<32x8xf32> to vector<32xf32>
    %149 = vector.shape_cast %148 : vector<32xf32> to vector<32x1xf32>
    %cst_60 = arith.constant 8.000000e+00 : f32
    %150 = vector.broadcast %cst_60 : f32 to vector<32x1xf32>
    %151 = arith.divf %149, %150 : vector<32x1xf32>
    %cst_61 = arith.constant 9.99999997E-7 : f32
    %152 = vector.broadcast %cst_61 : f32 to vector<32x1xf32>
    %153 = arith.addf %151, %152 : vector<32x1xf32>
    %154 = math.rsqrt %153 : vector<32x1xf32>
    %155 = vector.broadcast %154 : vector<32x1xf32> to vector<32x8xf32>
    %156 = arith.mulf %146, %155 : vector<32x8xf32>
    %157 = vector.broadcast %0 : vector<1x8xf32> to vector<32x8xf32>
    %158 = arith.mulf %156, %157 : vector<32x8xf32>
    %159 = vector.broadcast %1 : vector<1x8xf32> to vector<32x8xf32>
    %160 = arith.addf %158, %159 : vector<32x8xf32>
    %cst_62 = arith.constant 5.000000e-01 : f32
    %161 = vector.broadcast %cst_62 : f32 to vector<32x8xf32>
    %162 = arith.mulf %161, %160 : vector<32x8xf32>
    %cst_63 = arith.constant 0.707106769 : f32
    %163 = vector.broadcast %cst_63 : f32 to vector<32x8xf32>
    %164 = arith.mulf %160, %163 : vector<32x8xf32>
    %cst_64 = arith.constant 0.000000e+00 : f32
    %165 = vector.broadcast %cst_64 : f32 to vector<32x8xf32>
    %166 = arith.cmpf olt, %164, %165 : vector<32x8xf32>
    %cst_65 = arith.constant -1.000000e+00 : f32
    %cst_66 = arith.constant 1.000000e+00 : f32
    %167 = vector.broadcast %cst_65 : f32 to vector<32x8xf32>
    %168 = vector.broadcast %cst_66 : f32 to vector<32x8xf32>
    %169 = arith.select %166, %167, %168 : vector<32x8xi1>, vector<32x8xf32>
    %170 = math.absf %164 : vector<32x8xf32>
    %cst_67 = arith.constant 0.327591091 : f32
    %171 = vector.broadcast %cst_67 : f32 to vector<32x8xf32>
    %172 = arith.mulf %171, %170 : vector<32x8xf32>
    %cst_68 = arith.constant 1.000000e+00 : f32
    %173 = vector.broadcast %cst_68 : f32 to vector<32x8xf32>
    %174 = arith.addf %173, %172 : vector<32x8xf32>
    %cst_69 = arith.constant 1.000000e+00 : f32
    %175 = vector.broadcast %cst_69 : f32 to vector<32x8xf32>
    %176 = arith.divf %175, %174 : vector<32x8xf32>
    %cst_70 = arith.constant 1.06140542 : f32
    %177 = vector.broadcast %cst_70 : f32 to vector<32x8xf32>
    %178 = arith.mulf %177, %176 : vector<32x8xf32>
    %cst_71 = arith.constant -1.45315206 : f32
    %179 = vector.broadcast %cst_71 : f32 to vector<32x8xf32>
    %180 = arith.addf %178, %179 : vector<32x8xf32>
    %181 = arith.mulf %180, %176 : vector<32x8xf32>
    %cst_72 = arith.constant 1.42141378 : f32
    %182 = vector.broadcast %cst_72 : f32 to vector<32x8xf32>
    %183 = arith.addf %181, %182 : vector<32x8xf32>
    %184 = arith.mulf %183, %176 : vector<32x8xf32>
    %cst_73 = arith.constant -0.284496725 : f32
    %185 = vector.broadcast %cst_73 : f32 to vector<32x8xf32>
    %186 = arith.addf %184, %185 : vector<32x8xf32>
    %187 = arith.mulf %186, %176 : vector<32x8xf32>
    %cst_74 = arith.constant 0.254829586 : f32
    %188 = vector.broadcast %cst_74 : f32 to vector<32x8xf32>
    %189 = arith.addf %187, %188 : vector<32x8xf32>
    %190 = arith.mulf %189, %176 : vector<32x8xf32>
    %cst_75 = arith.constant 0.000000e+00 : f32
    %191 = vector.broadcast %cst_75 : f32 to vector<32x8xf32>
    %192 = arith.subf %191, %170 : vector<32x8xf32>
    %193 = arith.mulf %192, %170 : vector<32x8xf32>
    %194 = math.exp %193 : vector<32x8xf32>
    %195 = arith.mulf %190, %194 : vector<32x8xf32>
    %cst_76 = arith.constant 1.000000e+00 : f32
    %196 = vector.broadcast %cst_76 : f32 to vector<32x8xf32>
    %197 = arith.subf %196, %195 : vector<32x8xf32>
    %198 = arith.mulf %169, %197 : vector<32x8xf32>
    %cst_77 = arith.constant 1.000000e+00 : f32
    %199 = vector.broadcast %cst_77 : f32 to vector<32x8xf32>
    %200 = arith.addf %199, %198 : vector<32x8xf32>
    %201 = arith.mulf %162, %200 : vector<32x8xf32>
    %cst_78 = arith.constant dense<0.000000e+00> : vector<32x32xf32>
    %202 = tpu.matmul %201, %2, %cst_78 {dimension_numbers = #tpu.dot_dimension_numbers<[1], [0], [0], [1], [0, 0, 1, 1], [], []>} : vector<32x8xf32>, vector<8x32xf32>, vector<32x32xf32> -> vector<32x32xf32>
    %203 = vector.broadcast %3 : vector<1x32xf32> to vector<32x32xf32>
    %204 = arith.addf %202, %203 : vector<32x32xf32>
    %205 = vector.extract_strided_slice %9 {offsets = [0, 24], sizes = [32, 8], strides = [1, 1]} : vector<32x32xf32> to vector<32x8xf32>
    %cst_79 = arith.constant dense<0.000000e+00> : vector<32xf32>
    %206 = vector.multi_reduction <add>, %205, %cst_79 [1] : vector<32x8xf32> to vector<32xf32>
    %207 = vector.shape_cast %206 : vector<32xf32> to vector<32x1xf32>
    %cst_80 = arith.constant 8.000000e+00 : f32
    %208 = vector.broadcast %cst_80 : f32 to vector<32x1xf32>
    %209 = arith.divf %207, %208 : vector<32x1xf32>
    %210 = vector.broadcast %209 : vector<32x1xf32> to vector<32x8xf32>
    %211 = arith.subf %205, %210 : vector<32x8xf32>
    %212 = arith.mulf %211, %211 : vector<32x8xf32>
    %cst_81 = arith.constant dense<0.000000e+00> : vector<32xf32>
    %213 = vector.multi_reduction <add>, %212, %cst_81 [1] : vector<32x8xf32> to vector<32xf32>
    %214 = vector.shape_cast %213 : vector<32xf32> to vector<32x1xf32>
    %cst_82 = arith.constant 8.000000e+00 : f32
    %215 = vector.broadcast %cst_82 : f32 to vector<32x1xf32>
    %216 = arith.divf %214, %215 : vector<32x1xf32>
    %cst_83 = arith.constant 9.99999997E-7 : f32
    %217 = vector.broadcast %cst_83 : f32 to vector<32x1xf32>
    %218 = arith.addf %216, %217 : vector<32x1xf32>
    %219 = math.rsqrt %218 : vector<32x1xf32>
    %220 = vector.broadcast %219 : vector<32x1xf32> to vector<32x8xf32>
    %221 = arith.mulf %211, %220 : vector<32x8xf32>
    %222 = vector.broadcast %0 : vector<1x8xf32> to vector<32x8xf32>
    %223 = arith.mulf %221, %222 : vector<32x8xf32>
    %224 = vector.broadcast %1 : vector<1x8xf32> to vector<32x8xf32>
    %225 = arith.addf %223, %224 : vector<32x8xf32>
    %cst_84 = arith.constant 5.000000e-01 : f32
    %226 = vector.broadcast %cst_84 : f32 to vector<32x8xf32>
    %227 = arith.mulf %226, %225 : vector<32x8xf32>
    %cst_85 = arith.constant 0.707106769 : f32
    %228 = vector.broadcast %cst_85 : f32 to vector<32x8xf32>
    %229 = arith.mulf %225, %228 : vector<32x8xf32>
    %cst_86 = arith.constant 0.000000e+00 : f32
    %230 = vector.broadcast %cst_86 : f32 to vector<32x8xf32>
    %231 = arith.cmpf olt, %229, %230 : vector<32x8xf32>
    %cst_87 = arith.constant -1.000000e+00 : f32
    %cst_88 = arith.constant 1.000000e+00 : f32
    %232 = vector.broadcast %cst_87 : f32 to vector<32x8xf32>
    %233 = vector.broadcast %cst_88 : f32 to vector<32x8xf32>
    %234 = arith.select %231, %232, %233 : vector<32x8xi1>, vector<32x8xf32>
    %235 = math.absf %229 : vector<32x8xf32>
    %cst_89 = arith.constant 0.327591091 : f32
    %236 = vector.broadcast %cst_89 : f32 to vector<32x8xf32>
    %237 = arith.mulf %236, %235 : vector<32x8xf32>
    %cst_90 = arith.constant 1.000000e+00 : f32
    %238 = vector.broadcast %cst_90 : f32 to vector<32x8xf32>
    %239 = arith.addf %238, %237 : vector<32x8xf32>
    %cst_91 = arith.constant 1.000000e+00 : f32
    %240 = vector.broadcast %cst_91 : f32 to vector<32x8xf32>
    %241 = arith.divf %240, %239 : vector<32x8xf32>
    %cst_92 = arith.constant 1.06140542 : f32
    %242 = vector.broadcast %cst_92 : f32 to vector<32x8xf32>
    %243 = arith.mulf %242, %241 : vector<32x8xf32>
    %cst_93 = arith.constant -1.45315206 : f32
    %244 = vector.broadcast %cst_93 : f32 to vector<32x8xf32>
    %245 = arith.addf %243, %244 : vector<32x8xf32>
    %246 = arith.mulf %245, %241 : vector<32x8xf32>
    %cst_94 = arith.constant 1.42141378 : f32
    %247 = vector.broadcast %cst_94 : f32 to vector<32x8xf32>
    %248 = arith.addf %246, %247 : vector<32x8xf32>
    %249 = arith.mulf %248, %241 : vector<32x8xf32>
    %cst_95 = arith.constant -0.284496725 : f32
    %250 = vector.broadcast %cst_95 : f32 to vector<32x8xf32>
    %251 = arith.addf %249, %250 : vector<32x8xf32>
    %252 = arith.mulf %251, %241 : vector<32x8xf32>
    %cst_96 = arith.constant 0.254829586 : f32
    %253 = vector.broadcast %cst_96 : f32 to vector<32x8xf32>
    %254 = arith.addf %252, %253 : vector<32x8xf32>
    %255 = arith.mulf %254, %241 : vector<32x8xf32>
    %cst_97 = arith.constant 0.000000e+00 : f32
    %256 = vector.broadcast %cst_97 : f32 to vector<32x8xf32>
    %257 = arith.subf %256, %235 : vector<32x8xf32>
    %258 = arith.mulf %257, %235 : vector<32x8xf32>
    %259 = math.exp %258 : vector<32x8xf32>
    %260 = arith.mulf %255, %259 : vector<32x8xf32>
    %cst_98 = arith.constant 1.000000e+00 : f32
    %261 = vector.broadcast %cst_98 : f32 to vector<32x8xf32>
    %262 = arith.subf %261, %260 : vector<32x8xf32>
    %263 = arith.mulf %234, %262 : vector<32x8xf32>
    %cst_99 = arith.constant 1.000000e+00 : f32
    %264 = vector.broadcast %cst_99 : f32 to vector<32x8xf32>
    %265 = arith.addf %264, %263 : vector<32x8xf32>
    %266 = arith.mulf %227, %265 : vector<32x8xf32>
    %cst_100 = arith.constant dense<0.000000e+00> : vector<32x32xf32>
    %267 = tpu.matmul %266, %2, %cst_100 {dimension_numbers = #tpu.dot_dimension_numbers<[1], [0], [0], [1], [0, 0, 1, 1], [], []>} : vector<32x8xf32>, vector<8x32xf32>, vector<32x32xf32> -> vector<32x32xf32>
    %268 = vector.broadcast %3 : vector<1x32xf32> to vector<32x32xf32>
    %269 = arith.addf %267, %268 : vector<32x32xf32>
    %270 = tpu.concatenate %74, %139, %204, %269 in 1 : vector<32x32xf32>, vector<32x32xf32>, vector<32x32xf32>, vector<32x32xf32> -> vector<32x128xf32>
    %c0_101 = arith.constant 0 : index
    %c0_102 = arith.constant 0 : index
    %271 = vector.load %arg8[%c0_101, %c0_102] : memref<32x128xf32, #tpu.memory_space<vmem>>, vector<32x128xf32>
    tpu.vector_store %arg8[%c0_101, %c0_102], %270 {strides = array<i32>} : memref<32x128xf32, #tpu.memory_space<vmem>>, vector<32x128xf32>,
    return
  }
  func.func @transform_0(%arg0: i32) -> (i32, i32) {
    %c0_i32 = arith.constant 0 : i32
    %c0_i32_0 = arith.constant 0 : i32
    return %arg0, %c0_i32 : i32, i32
  }
  func.func @transform_1(%arg0: i32) -> (i32, i32) {
    %c0_i32 = arith.constant 0 : i32
    %c0_i32_0 = arith.constant 0 : i32
    %c0_i32_1 = arith.constant 0 : i32
    return %c0_i32, %c0_i32_0 : i32, i32
  }
  func.func @transform_2(%arg0: i32) -> (i32, i32) {
    %c0_i32 = arith.constant 0 : i32
    %c0_i32_0 = arith.constant 0 : i32
    %c0_i32_1 = arith.constant 0 : i32
    return %c0_i32, %c0_i32_0 : i32, i32
  }
  func.func @transform_3(%arg0: i32) -> (i32, i32) {
    %c0_i32 = arith.constant 0 : i32
    %c0_i32_0 = arith.constant 0 : i32
    %c0_i32_1 = arith.constant 0 : i32
    return %c0_i32, %c0_i32_0 : i32, i32
  }
  func.func @transform_4(%arg0: i32) -> (i32, i32) {
    %c0_i32 = arith.constant 0 : i32
    %c0_i32_0 = arith.constant 0 : i32
    %c0_i32_1 = arith.constant 0 : i32
    return %c0_i32, %c0_i32_0 : i32, i32
  }
  func.func @transform_5(%arg0: i32) -> (i32, i32) {
    %c0_i32 = arith.constant 0 : i32
    %c0_i32_0 = arith.constant 0 : i32
    %c0_i32_1 = arith.constant 0 : i32
    return %c0_i32, %c0_i32_0 : i32, i32
  }
  func.func @transform_6(%arg0: i32) -> (i32, i32) {
    %c0_i32 = arith.constant 0 : i32
    %c0_i32_0 = arith.constant 0 : i32
    %c0_i32_1 = arith.constant 0 : i32
    return %c0_i32, %c0_i32_0 : i32, i32
  }
  func.func @transform_7(%arg0: i32) -> (i32, i32) {
    %c0_i32 = arith.constant 0 : i32
    %c0_i32_0 = arith.constant 0 : i32
    return %arg0, %c0_i32 : i32, i32
  }
}

</mosaic_0001>

<bundles_post_ra>
// kernel: tpu_custom_call.1
= control target key start
LH: loop header
LB: loop body
LE: loop exit
PB: predicated region body
PF: predicated region fallthrough
CT: control target
= control target key end

     0   :  { %12 = vsyncpa [#allocation3], 0  ;;  %s2861_s0 = inlined_call_operand.vmem [shape: f32[128,32], index: 0, kind: input, shape index: {}]   ;;  %s2862_s1 = inlined_call_operand.vmem [shape: f32[32,32], index: 1, kind: input, shape index: {}]   ;;  %s2863_s2 = inlined_call_operand.vmem [shape: f32[1,32], index: 2, kind: input, shape index: {}]   ;;  %s2864_s3 = inlined_call_operand.vmem [shape: f32[1,8], index: 3, kind: input, shape index: {}]   ;;  %s2865_s4 = inlined_call_operand.vmem [shape: f32[1,8], index: 4, kind: input, shape index: {}]   ;;  %s2866_s5 = inlined_call_operand.vmem [shape: f32[8,32], index: 5, kind: input, shape index: {}]   ;;  %s2867_s6 = inlined_call_operand.vmem [shape: f32[1,32], index: 6, kind: input, shape index: {}]   ;;  %s2868_s7 = inlined_call_operand.hbm [shape: f32[128,128], index: 7, kind: output, shape index: {}]  }
   0x1   :  { %14 = vsyncpa [#allocation3 + $0x1], 0  ;;  %s2122_s24 = smov 0   ;;  %s2124_s25 = smov 0  }
   0x2   :  { %s2126_s26 = smov 0   ;;  %s2128_s27 = smov 0  }
   0x3 LB: > { %s2143_s28 = sadd.s32 4294967295, %s2068_s27   ;;  %s1749_s29 = sadd.s32 4294967294, %s2068_s27   ;;  %s2068_s27 = sphi %s2128_s27, %s2874_s27   ;;  %s2064_s26 = sphi %s2126_s26, %s2873_s26   ;;  %s2060_s25 = sphi %s2124_s25, %s2872_s25   ;;  %s2056_s24 = sphi %s2122_s24, %s2871_s24  }
   0x4   : > { %s2147_s30 = sadd.s32 1, %s2068_s27   ;;  %s179_s8 = sadd.s32 1, %s2064_s26 }
   0x5   : > { %s176_s9 = ssub.s32 %s2068_s27, %s2147_s30  ;;  %p189_p0 = scmp.ne.s32.totalorder %s2064_s26, %s2060_s25 }
   0x6   : > { %p177_p1 = scmp.eq.s32.totalorder %s176_s9, 0  ;;  %p190_p2 = scmp.eq.s32.totalorder %s2143_s28, 3 }
   0x7   : > { %p195_p3 = scmp.ne.s32.totalorder %s2060_s25, %s2056_s24  ;;  %p196_p4 = scmp.eq.s32.totalorder %s1749_s29, 3 }
   0x8   : > { %s2158_s10 = scalar_select %p177_p1, %s2064_s26, %s179_s8  }
   0x9   : > { %p2160_p5 = por %p190_p2, %p189_p0  ;;  %p2164_p6 = por %p196_p4, %p195_p3 }
   0xa   : > { %p1752_p7 = scmp.ge.s32.totalorder %s2068_s27, 1  ;;  %p241_p8 = scmp.lt.s32.totalorder %s2068_s27, 5 }
   0xc   : > { %p242_p9 = pnand %p1752_p7, %p241_p8 }
   0xd   : > { %s1754_s17 = sshll.u32 (!%p242_p9), %s2143_s28, 2  ;;  %s2070_s14 = smov (!%p242_p9), 112  }
   0xe   : > { %245 = sbr.rel (%p242_p9) target bundleno = 1345 (0x541), region = 48  ;;  %p274_p10 = scmp.lt.s32.totalorder (!%p242_p9), %s1754_s17, 15 }
   0xf   : > { %s2071_s15 = smov (!%p242_p9), 120   ;;  %s2072_s16 = smov (!%p242_p9), 104  }
  0x10   : > { %s2073_s19 = smov (!%p242_p9), 8   ;;  %s2075_s23 = smov (!%p242_p9), 24  }
  0x11   : > { %s2077_s18 = smov (!%p242_p9), 32   ;;  %s2078_s20 = smov (!%p242_p9), 64  }
  0x12   : > { %s2079_s21 = smov (!%p242_p9), 96   ;;  %s1785_s9 = sshll.u32 (!%p242_p9), %s2143_s28, 9 }
  0x13   : > { %v291_v0 = vld [vmem:[%s2862_s1 + $0x18] sm:$0xff]  ;;  %v290_v1 = vld [vmem:[%s2862_s1 + $0x10] sm:$0xff]  ;;  %v289_v2 = vld [vmem:[%s2862_s1 + $0x8] sm:$0xff]  ;;  %s2876_s17 = smov (!%p274_p10, %s1754_s17), 15  ;;  %vm299_vm0 = vcmask 261120   ;;  %vm397_vm1 = vcmask 64512  }
  0x14   : > { %1814 = vmatprep.subr.mxu0 %v291_v0  ;;  %v288_v3 = vld [vmem:[%s2862_s1] sm:$0xff]  ;;  %s1755_s22 = sshll.u32 %s2876_s17, 3 }
  0x15   : > { %1815 = vmatpush3.msra.mxu0 %v291_v0  ;;  %s277_s8 = scalar_lea.vmem %s2861_s0, %s1755_s22  ;;  %v1756_v8 = vld [vmem:[%s2863_s2] ss:$0 sm:$0xff]  ;;  %s2074_s22 = smov 16  }
  0x16   : > { %1816 = vmatprep.subr.mxu0 %v290_v1  ;;  %v284_v4 = vld [vmem:[%s277_s8] sm:$0xff]  ;;  %v285_v5 = vld [vmem:[%s277_s8 + $0x8] sm:$0xff]  ;;  %v286_v6 = vld [vmem:[%s277_s8 + $0x10] sm:$0xff] }
  0x17   : > { %1817 = vmatpush3.msra.mxu0 %v290_v1  ;;  %1822 = vmatprep.mubr.msk.f32.mxu0 %vm299_vm0, %v284_v4  ;;  %v287_v7 = vld [vmem:[%s277_s8 + $0x18] sm:$0xff] }
  0x18   : > { %1818 = vmatprep.subr.mxu0 %v289_v2 }
  0x19   : > { %1819 = vmatpush3.msra.mxu0 %v289_v2 }
  0x1a   : > { %1820 = vmatprep.subr.mxu0 %v288_v3 }
  0x1b   : > { %1821 = vmatpush3.msra.mxu0 %v288_v3 }
  0x1c   : > { %1823 = vmatmul.mubr.msk.f32.vlgmr.msra.gmra.mxu0 %vm299_vm0, %v285_v5 }
  0x1d   : > { %1825 = vmatprep.mubr.msk.f32.mxu0 %vm299_vm0, %v286_v6 }
  0x20   : > { %1826 = vmatmul.mubr.msk.f32.gmra.mxu0 %vm299_vm0, %v287_v7 }
  0xdc   : > { %v1824_v9 = vpop.f32.mrf.mxu0 }
  0xdd   : > { %v2193_v10 = vadd.f32 %v1824_v9, %v1756_v8 }
  0xde   : > { %v378_v11 = vpop.f32.mrf.mxu0 }
  0xdf   : > { %995 = vrot.lane.b32.xlu1 %v2193_v10, %s2070_s14  ;;  %688 = vrot.lane.b32.xlu0 %v2193_v10, %s2071_s15  ;;  %v2199_v13 = vadd.f32 %v1756_v8, %v378_v11 }
  0xe0   : > { %v1827_v12 = vpop.f32.mrf.mxu0 }
  0xe1   : > { %v2205_v14 = vadd.f32 %v1827_v12, %v1756_v8  ;;  %v398_v17 = vsel %vm397_vm1, %v2199_v13, 0.0 }
  0xe2   : > { %v388_v15 = vpop.f32.mrf.mxu0 }
  0xe3   : > { %1302 = vrot.lane.b32.xlu1 %v2193_v10, %s2072_s16  ;;  %686 = vrot.lane.b32.xlu0 %v2199_v13, %s2071_s15  ;;  %v2217_v16 = vadd.f32 %v1756_v8, %v388_v15 }
  0xe7   : > { %993 = vrot.lane.b32.xlu0 %v2199_v13, %s2070_s14  ;;  %692 = vrot.lane.b32.xlu1 %v2205_v14, %s2071_s15 }
  0xeb   : > { %1300 = vrot.lane.b32.xlu0 %v2199_v13, %s2072_s16  ;;  %999 = vrot.lane.b32.xlu1 %v2205_v14, %s2070_s14 }
  0xef   : > { %1306 = vrot.lane.b32.xlu1 %v2205_v14, %s2072_s16 }
  0xf3   : > { %690 = vrot.lane.b32.xlu1 %v2217_v16, %s2071_s15 }
 0x10a   : > { %399 = vadd.xlane.f32.xlu0 %v398_v17 }
 0x120   : > { %997 = vrot.lane.b32.xlu0 %v2217_v16, %s2070_s14 }
 0x124   : > { %1304 = vrot.lane.b32.xlu0 %v2217_v16, %s2072_s16 }
 0x151   : > { %v996_v18 = vpop.permute.xlu1 %995  ;;  %v689_v19 = vpop.permute.xlu0 %688 }
 0x152   : > { %v701_v20 = vsel %vm397_vm1, %v689_v19, 0.0  ;;  %v1008_v21 = vsel %vm397_vm1, %v996_v18, 0.0 }
 0x153   : > { %702 = vadd.xlane.f32.xlu1 %v701_v20  ;;  %1009 = vadd.xlane.f32.xlu0 %v1008_v21 }
 0x155   : > { %v1303_v22 = vpop.permute.xlu1 %1302  ;;  %v687_v23 = vpop.permute.xlu0 %686 }
 0x156   : > { %v1315_v24 = vsel %vm397_vm1, %v1303_v22, 0.0  ;;  %v698_v28 = vsel %vm397_vm1, %v687_v23, 0.0  ;;  %v404_v23 = vsel %vm397_vm1, %v2217_v16, 0.0 }
 0x157   : > { %1316 = vadd.xlane.f32.xlu0 %v1315_v24  ;;  %v407_v24 = vsel %vm397_vm1, %v2205_v14, 0.0 }
 0x159   : > { %v994_v25 = vpop.permute.xlu0 %993  ;;  %v693_v26 = vpop.permute.xlu1 %692 }
 0x15a   : > { %v1005_v27 = vsel %vm397_vm1, %v994_v25, 0.0  ;;  %v707_v29 = vsel %vm397_vm1, %v693_v26, 0.0  ;;  %v401_v25 = vsel %vm397_vm1, %v2193_v10, 0.0 }
 0x15b   : > { %1006 = vadd.xlane.f32.xlu1 %v1005_v27  ;;  %699 = vadd.xlane.f32.xlu0 %v698_v28  ;;  %v2310_v28 = vld [vmem:[%s2865_s4] ss:$0 sm:$0xff] }
 0x15d   : > { %v1301_v30 = vpop.permute.xlu0 %1300  ;;  %v1000_v31 = vpop.permute.xlu1 %999 }
 0x15e   : > { %v1312_v32 = vsel %vm397_vm1, %v1301_v30, 0.0  ;;  %v1014_v33 = vsel %vm397_vm1, %v1000_v31, 0.0 }
 0x15f   : > { %1313 = vadd.xlane.f32.xlu1 %v1312_v32  ;;  %708 = vadd.xlane.f32.xlu0 %v707_v29 }
 0x161   : > { %v1307_v34 = vpop.permute.xlu1 %1306 }
 0x162   : > { %v1321_v35 = vsel %vm397_vm1, %v1307_v34, 0.0  ;;  %v2326_v34 = vld [vmem:[%s2864_s3] ss:$0 sm:$0xff] }
 0x163   : > { %1015 = vadd.xlane.f32.xlu0 %v1014_v33 }
 0x165   : > { %v691_v36 = vpop.permute.xlu1 %690 }
 0x166   : > { %v704_v37 = vsel %vm397_vm1, %v691_v36, 0.0 }
 0x167   : > { %1322 = vadd.xlane.f32.xlu0 %v1321_v35 }
 0x16b   : > { %705 = vadd.xlane.f32.xlu0 %v704_v37 }
 0x193   : > { %v2237_v38 = vpop.xlane.xlu0 %399 }
 0x197   : > { %v998_v39 = vpop.permute.xlu0 %997 }
 0x198   : > { %v1011_v40 = vsel %vm397_vm1, %v998_v39, 0.0 }
 0x199   : > { %1012 = vadd.xlane.f32.xlu1 %v1011_v40 }
 0x19b   : > { %v1305_v41 = vpop.permute.xlu0 %1304 }
 0x19c   : > { %v1318_v42 = vsel %vm397_vm1, %v1305_v41, 0.0 }
 0x19d   : > { %1319 = vadd.xlane.f32.xlu1 %v1318_v42 }
 0x1dc   : > { %v703_v43 = vpop.xlane.xlu1 %702  ;;  %v1010_v44 = vpop.xlane.xlu0 %1009 }
 0x1dd   : > { %v711_v45 = vmul.f32 0.125, %v703_v43  ;;  %v1018_v46 = vmul.f32 0.125, %v1010_v44 }
 0x1df   : > { %v2242_v47 = vsub.f32 %v2193_v10, %v711_v45  ;;  %v2245_v48 = vsub.f32 %v2193_v10, %v1018_v46 }
 0x1e0   : > { %v1317_v49 = vpop.xlane.xlu0 %1316 }
 0x1e1   : > { %v1325_v50 = vmul.f32 0.125, %v1317_v49  ;;  %v719_v51 = vmul.f32 %v2242_v47, %v2242_v47  ;;  %v1026_v52 = vmul.f32 %v2245_v48, %v2245_v48 }
 0x1e3   : > { %v2252_v53 = vsub.f32 %v2193_v10, %v1325_v50  ;;  %728 = vrot.lane.b32.xlu0 %v719_v51, %s2071_s15  ;;  %1035 = vrot.lane.b32.xlu1 %v1026_v52, %s2070_s14 }
 0x1e4   : > { %v1007_v54 = vpop.xlane.xlu1 %1006  ;;  %v700_v55 = vpop.xlane.xlu0 %699 }
 0x1e5   : > { %v1017_v56 = vmul.f32 0.125, %v1007_v54  ;;  %v710_v57 = vmul.f32 0.125, %v700_v55  ;;  %v1333_v58 = vmul.f32 %v2252_v53, %v2252_v53 }
 0x1e7   : > { %v2259_v59 = vsub.f32 %v2199_v13, %v1017_v56  ;;  %v2262_v60 = vsub.f32 %v2199_v13, %v710_v57  ;;  %1342 = vrot.lane.b32.xlu1 %v1333_v58, %s2072_s16 }
 0x1e8   : > { %v1314_v61 = vpop.xlane.xlu1 %1313  ;;  %v709_v62 = vpop.xlane.xlu0 %708 }
 0x1e9   : > { %v1324_v63 = vmul.f32 0.125, %v1314_v61  ;;  %v713_v0 = vmul.f32 0.125, %v709_v62  ;;  %v1025_v1 = vmul.f32 %v2259_v59, %v2259_v59  ;;  %v718_v2 = vmul.f32 %v2262_v60, %v2262_v60 }
 0x1ea   : > { %v411_v62 = vmul.f32 0.125, %v2237_v38 }
 0x1eb   : > { %v2270_v3 = vsub.f32 %v2199_v13, %v1324_v63  ;;  %v2273_v4 = vsub.f32 %v2205_v14, %v713_v0  ;;  %1033 = vrot.lane.b32.xlu0 %v1025_v1, %s2070_s14  ;;  %726 = vrot.lane.b32.xlu1 %v718_v2, %s2071_s15 }
 0x1ec   : > { %v1016_v5 = vpop.xlane.xlu0 %1015  ;;  %v2351_v63 = vsub.f32 %v2199_v13, %v411_v62 }
 0x1ed   : > { %v1020_v6 = vmul.f32 0.125, %v1016_v5  ;;  %v1332_v7 = vmul.f32 %v2270_v3, %v2270_v3  ;;  %v721_v8 = vmul.f32 %v2273_v4, %v2273_v4 }
 0x1ef   : > { %v2282_v9 = vsub.f32 %v2205_v14, %v1020_v6  ;;  %1340 = vrot.lane.b32.xlu0 %v1332_v7, %s2072_s16  ;;  %732 = vrot.lane.b32.xlu1 %v721_v8, %s2071_s15  ;;  %v419_v6 = vmul.f32 %v2351_v63, %v2351_v63 }
 0x1f0   : > { %v1323_v11 = vpop.xlane.xlu0 %1322 }
 0x1f1   : > { %v1327_v12 = vmul.f32 0.125, %v1323_v11  ;;  %v1028_v15 = vmul.f32 %v2282_v9, %v2282_v9  ;;  %v423_v38 = vsel %vm397_vm1, %v419_v6, 0.0 }
 0x1f3   : > { %v2289_v17 = vsub.f32 %v2205_v14, %v1327_v12  ;;  %1039 = vrot.lane.b32.xlu1 %v1028_v15, %s2070_s14 }
 0x1f4   : > { %v706_v18 = vpop.xlane.xlu0 %705 }
 0x1f5   : > { %v712_v19 = vmul.f32 0.125, %v706_v18  ;;  %v1335_v20 = vmul.f32 %v2289_v17, %v2289_v17 }
 0x1f7   : > { %v2295_v21 = vsub.f32 %v2217_v16, %v712_v19  ;;  %1346 = vrot.lane.b32.xlu1 %v1335_v20, %s2072_s16 }
 0x1f9   : > { %v720_v22 = vmul.f32 %v2295_v21, %v2295_v21 }
 0x1fb   : > { %730 = vrot.lane.b32.xlu1 %v720_v22, %s2071_s15 }
 0x20e   : > { %405 = vadd.xlane.f32.xlu0 %v404_v23 }
 0x212   : > { %408 = vadd.xlane.f32.xlu0 %v407_v24 }
 0x21f   : > { %402 = vadd.xlane.f32.xlu1 %v401_v25 }
 0x222   : > { %v1013_v26 = vpop.xlane.xlu1 %1012 }
 0x223   : > { %v1019_v27 = vmul.f32 0.125, %v1013_v26 }
 0x225   : > { %v2313_v29 = vsub.f32 %v2217_v16, %v1019_v27 }
 0x226   : > { %v1320_v30 = vpop.xlane.xlu1 %1319 }
 0x227   : > { %v1326_v31 = vmul.f32 0.125, %v1320_v30  ;;  %v1027_v33 = vmul.f32 %v2313_v29, %v2313_v29 }
 0x228   : > { %773 = vrot.lane.b32.xlu0 %v2310_v28, %s2073_s19 }
 0x229   : > { %v2318_v32 = vsub.f32 %v2217_v16, %v1326_v31 }
 0x22b   : > { %v1334_v35 = vmul.f32 %v2318_v32, %v2318_v32 }
 0x22c   : > { %1037 = vrot.lane.b32.xlu0 %v1027_v33, %s2070_s14 }
 0x230   : > { %1344 = vrot.lane.b32.xlu0 %v1334_v35, %s2072_s16  ;;  %766 = vrot.lane.b32.xlu1 %v2326_v34, %s2073_s19 }
 0x234   : > { %1073 = vrot.lane.b32.xlu1 %v2326_v34, %s2074_s22 }
 0x238   : > { %1380 = vrot.lane.b32.xlu1 %v2326_v34, %s2075_s23 }
 0x255   : > { %v1036_v36 = vpop.permute.xlu1 %1035  ;;  %v729_v37 = vpop.permute.xlu0 %728 }
 0x256   : > { %v741_v39 = vsel %vm397_vm1, %v729_v37, 0.0  ;;  %v1048_v41 = vsel %vm397_vm1, %v1036_v36, 0.0 }
 0x257   : > { %742 = vadd.xlane.f32.xlu0 %v741_v39 }
 0x259   : > { %v1343_v40 = vpop.permute.xlu1 %1342 }
 0x25a   : > { %v1355_v45 = vsel %vm397_vm1, %v1343_v40, 0.0 }
 0x25b   : > { %1049 = vadd.xlane.f32.xlu0 %v1048_v41 }
 0x25d   : > { %v727_v42 = vpop.permute.xlu1 %726  ;;  %v1034_v43 = vpop.permute.xlu0 %1033 }
 0x25e   : > { %v738_v44 = vsel %vm397_vm1, %v727_v42, 0.0  ;;  %v1045_v50 = vsel %vm397_vm1, %v1034_v43, 0.0 }
 0x25f   : > { %739 = vadd.xlane.f32.xlu1 %v738_v44  ;;  %1356 = vadd.xlane.f32.xlu0 %v1355_v45 }
 0x261   : > { %v733_v46 = vpop.permute.xlu1 %732  ;;  %v1341_v51 = vpop.permute.xlu0 %1340 }
 0x262   : > { %v747_v49 = vsel %vm397_vm1, %v733_v46, 0.0  ;;  %v1352_v55 = vsel %vm397_vm1, %v1341_v51, 0.0 }
 0x263   : > { %748 = vadd.xlane.f32.xlu0 %v747_v49  ;;  %1046 = vadd.xlane.f32.xlu1 %v1045_v50 }
 0x265   : > { %v1040_v52 = vpop.permute.xlu1 %1039 }
 0x266   : > { %v1054_v54 = vsel %vm397_vm1, %v1040_v52, 0.0 }
 0x267   : > { %1055 = vadd.xlane.f32.xlu0 %v1054_v54  ;;  %1353 = vadd.xlane.f32.xlu1 %v1352_v55 }
 0x269   : > { %v1347_v56 = vpop.permute.xlu1 %1346 }
 0x26a   : > { %v1361_v57 = vsel %vm397_vm1, %v1347_v56, 0.0 }
 0x26b   : > { %1362 = vadd.xlane.f32.xlu0 %v1361_v57 }
 0x26d   : > { %v731_v58 = vpop.permute.xlu1 %730 }
 0x26e   : > { %v744_v61 = vsel %vm397_vm1, %v731_v58, 0.0 }
 0x26f   : > { %745 = vadd.xlane.f32.xlu1 %v744_v61 }
 0x281   : > { %1080 = vrot.lane.b32.xlu0 %v2310_v28, %s2074_s22  ;;  %s270_s22 = sand.u32 1, %s2060_s25  }
 0x282   : > { %s2820_s17 = scalar_lea.sflag [#allocation3], %s270_s22 }
 0x297   : > { %v406_v0 = vpop.xlane.xlu0 %405 }
 0x298   : > { %v413_v1 = vmul.f32 0.125, %v406_v0 }
 0x29a   : > { %v2354_v2 = vsub.f32 %v2217_v16, %v413_v1 }
 0x29b   : > { %v409_v5 = vpop.xlane.xlu0 %408 }
 0x29c   : > { %v414_v7 = vmul.f32 0.125, %v409_v5  ;;  %v421_v13 = vmul.f32 %v2354_v2, %v2354_v2 }
 0x29e   : > { %v2359_v8 = vsub.f32 %v2205_v14, %v414_v7  ;;  %v429_v16 = vsel %vm397_vm1, %v421_v13, 0.0 }
 0x29f   : > { %v2361_v11 = vpop.permute.xlu0 %773 }
 0x2a0   : > { %424 = vadd.xlane.f32.xlu0 %v423_v38  ;;  %v422_v15 = vmul.f32 %v2359_v8, %v2359_v8 }
 0x2a2   : > { %v432_v19 = vsel %vm397_vm1, %v422_v15, 0.0 }
 0x2a3   : > { %v1038_v12 = vpop.permute.xlu0 %1037 }
 0x2a4   : > { %430 = vadd.xlane.f32.xlu0 %v429_v16  ;;  %v1051_v18 = vsel %vm397_vm1, %v1038_v12, 0.0 }
 0x2a5   : > { %1052 = vadd.xlane.f32.xlu1 %v1051_v18 }
 0x2a7   : > { %v1345_v14 = vpop.permute.xlu0 %1344 }
 0x2a8   : > { %433 = vadd.xlane.f32.xlu0 %v432_v19  ;;  %v1358_v20 = vsel %vm397_vm1, %v1345_v14, 0.0  ;;  %v403_v22 = vpop.xlane.xlu1 %402 }
 0x2a9   : > { %1359 = vadd.xlane.f32.xlu1 %v1358_v20  ;;  %v412_v23 = vmul.f32 0.125, %v403_v22 }
 0x2ab   : > { %v2375_v24 = vsub.f32 %v2193_v10, %v412_v23 }
 0x2ac   : > { %v2377_v25 = vpop.permute.xlu1 %766 }
 0x2ad   : > { %v420_v26 = vmul.f32 %v2375_v24, %v2375_v24 }
 0x2af   : > { %v426_v27 = vsel %vm397_vm1, %v420_v26, 0.0 }
 0x2b0   : > { %v2382_v30 = vpop.permute.xlu1 %1073 }
 0x2b4   : > { %v2384_v36 = vpop.permute.xlu1 %1380 }
 0x2ba   : > { %1387 = vrot.lane.b32.xlu1 %v2310_v28, %s2075_s23  ;;  %s1753_s23 = sshll.u32 %s270_s22, 5 }
 0x2bb   : > { %s272_s29 = scalar_lea.vmem [#allocation2], %s1753_s23 }
 0x2bc   : > { %s1687_s8 = sshll.u32 %s272_s29, 4  ;;  %s2808_s8 = int_to_ptr.vmem [resolvable:$true] %s1687_s8 }
 0x2de   : > { %427 = vadd.xlane.f32.xlu1 %v426_v27 }
 0x2e0   : > { %v743_v31 = vpop.xlane.xlu0 %742 }
 0x2e1   : > { %v751_v33 = vmul.f32 0.125, %v743_v31 }
 0x2e3   : > { %v755_v35 = vadd.f32 1e-06, %v751_v33 }
 0x2e4   : > { %v1050_v37 = vpop.xlane.xlu0 %1049 }
 0x2e5   : > { %1910 = vrsqrt.f32 %v755_v35  ;;  %v1058_v39 = vmul.f32 0.125, %v1050_v37 }
 0x2e7   : > { %v1062_v10 = vadd.f32 1e-06, %v1058_v39 }
 0x2e8   : > { %v740_v40 = vpop.xlane.xlu1 %739  ;;  %v2386_v41 = vpop.xlane.xlu0 %1356 }
 0x2e9   : > { %1912 = vrsqrt.f32 %v1062_v10  ;;  %v750_v42 = vmul.f32 0.125, %v740_v40 }
 0x2eb   : > { %v754_v43 = vadd.f32 1e-06, %v750_v42 }
 0x2ec   : > { %v1047_v44 = vpop.xlane.xlu1 %1046  ;;  %v749_v45 = vpop.xlane.xlu0 %748 }
 0x2ed   : > { %1914 = vrsqrt.f32 %v754_v43  ;;  %v1057_v46 = vmul.f32 0.125, %v1047_v44  ;;  %v753_v49 = vmul.f32 0.125, %v749_v45 }
 0x2ef   : > { %v1061_v50 = vadd.f32 1e-06, %v1057_v46  ;;  %v757_v51 = vadd.f32 1e-06, %v753_v49 }
 0x2f0   : > { %v1056_v52 = vpop.xlane.xlu0 %1055  ;;  %v2389_v58 = vpop.xlane.xlu1 %1353 }
 0x2f1   : > { %1916 = vrsqrt.f32 %v1061_v50  ;;  %v1060_v54 = vmul.f32 0.125, %v1056_v52 }
 0x2f2   : > { %v1911_v55 = vpop.eup %1910  ;;  %1918 = vrsqrt.f32 %v757_v51 }
 0x2f3   : > { %v1064_v56 = vadd.f32 1e-06, %v1060_v54  ;;  %v763_v57 = vmul.f32 %v1911_v55, %v2242_v47 }
 0x2f4   : > { %v2391_v61 = vpop.xlane.xlu0 %1362 }
 0x2f5   : > { %v770_v62 = vmul.f32 %v2377_v25, %v763_v57  ;;  %1920 = vrsqrt.f32 %v1064_v56 }
 0x2f6   : > { %v1913_v0 = vpop.eup %1912 }
 0x2f7   : > { %v1070_v1 = vmul.f32 %v1913_v0, %v2245_v48  ;;  %v2396_v5 = vadd.f32 %v2361_v11, %v770_v62 }
 0x2f8   : > { %v746_v6 = vpop.xlane.xlu1 %745  ;;  %v2398_v7 = vpop.permute.xlu0 %1080 }
 0x2f9   : > { %v752_v38 = vmul.f32 0.125, %v746_v6  ;;  %v1077_v13 = vmul.f32 %v2382_v30, %v1070_v1  ;;  %v2402_v12 = vmul.f32 0.70710677, %v2396_v5 }
 0x2fa   : > { %v1915_v47 = vpop.eup %1914 }
 0x2fb   : > { %v756_v16 = vadd.f32 1e-06, %v752_v38  ;;  %v2405_v15 = vadd.f32 %v2398_v7, %v1077_v13  ;;  %v762_v18 = vmul.f32 %v1915_v47, %v2262_v60  ;;  %v797_v48 = vand.u32 2147483647, %v2402_v12 }
 0x2fc   : > { %vm789_vm2 = vcmp.lt.f32.partialorder %v2402_v12, 0.0 }
 0x2fd   : > { %1922 = vrsqrt.f32 %v756_v16  ;;  %v2410_v14 = vmul.f32 0.70710677, %v2405_v15  ;;  %v801_v20 = vmul.f32 0.3275911, %v797_v48  ;;  %v769_v22 = vmul.f32 %v2377_v25, %v762_v18 }
 0x2fe   : > { %v1917_v19 = vpop.eup %1916  ;;  %v853_v52 = vsub.f32 0.0, %v797_v48 }
 0x2ff   : > { %v1069_v23 = vmul.f32 %v1917_v19, %v2259_v59  ;;  %v1104_v26 = vand.u32 2147483647, %v2410_v14  ;;  %v1919_v27 = vpop.eup %1918  ;;  %v805_v31 = vadd.f32 1.0, %v801_v20  ;;  %v2416_v33 = vadd.f32 %v2361_v11, %v769_v22 }
 0x300   : > { %v765_v59 = vmul.f32 %v1919_v27, %v2273_v4  ;;  %v857_v38 = vmul.f32 %v853_v52, %v797_v48  ;;  %v1367_v52 = vmul.f32 0.125, %v2391_v61  ;;  %vm1096_vm3 = vcmp.lt.f32.partialorder %v2410_v14, 0.0 }
 0x301   : > { %v1076_v60 = vmul.f32 %v2382_v30, %v1069_v23  ;;  %v1108_v35 = vmul.f32 0.3275911, %v1104_v26  ;;  %1924 = vrcp.f32 %v805_v31  ;;  %v2420_v37 = vmul.f32 0.70710677, %v2416_v33 }
 0x302   : > { %v1921_v39 = vpop.eup %1920  ;;  %v772_v50 = vmul.f32 %v2377_v25, %v765_v59  ;;  %v1160_v62 = vsub.f32 0.0, %v1104_v26  ;;  %v862_v27 = vmul.f32 1.442695, %v857_v38  ;;  %v1371_v61 = vadd.f32 1e-06, %v1367_v52 }
 0x303   : > { %v2423_v10 = vadd.f32 %v2398_v7, %v1076_v60  ;;  %v1112_v40 = vadd.f32 1.0, %v1108_v35  ;;  %v1072_v42 = vmul.f32 %v1921_v39, %v2282_v9  ;;  %v796_v43 = vand.u32 2147483647, %v2420_v37 }
 0x304   : > { %v1365_v9 = vmul.f32 0.125, %v2386_v41  ;;  %v2439_v55 = vadd.f32 %v2361_v11, %v772_v50  ;;  %v1164_v18 = vmul.f32 %v1160_v62, %v1104_v26  ;;  %vm788_vm4 = vcmp.lt.f32.partialorder %v2420_v37, 0.0 }
 0x305   : > { %v2429_v44 = vmul.f32 0.70710677, %v2423_v10  ;;  %1926 = vrcp.f32 %v1112_v40  ;;  %v1079_v45 = vmul.f32 %v2382_v30, %v1072_v42  ;;  %v800_v46 = vmul.f32 0.3275911, %v796_v43 }
 0x306   : > { %v2445_v1 = vmul.f32 0.70710677, %v2439_v55  ;;  %v1369_v13 = vadd.f32 1e-06, %v1365_v9  ;;  %v852_v31 = vsub.f32 0.0, %v796_v43 }
 0x307   : > { %v1103_v49 = vand.u32 2147483647, %v2429_v44  ;;  %v2435_v51 = vadd.f32 %v2398_v7, %v1079_v45  ;;  %v804_v4 = vadd.f32 1.0, %v800_v46  ;;  %v1169_v39 = vmul.f32 1.442695, %v1164_v18 }
 0x308   : > { %v799_v47 = vand.u32 2147483647, %v2445_v1  ;;  %v856_v45 = vmul.f32 %v852_v31, %v796_v43  ;;  %vm1095_vm5 = vcmp.lt.f32.partialorder %v2429_v44, 0.0  ;;  %vm791_vm6 = vcmp.lt.f32.partialorder %v2445_v1, 0.0 }
 0x309   : > { %v1107_v54 = vmul.f32 0.3275911, %v1103_v49  ;;  %v2442_v57 = vmul.f32 0.70710677, %v2435_v51  ;;  %1928 = vrcp.f32 %v804_v4  ;;  %v1159_v59 = vsub.f32 0.0, %v1103_v49 }
 0x30a   : > { %v1923_v56 = vpop.eup %1922  ;;  %v803_v22 = vmul.f32 0.3275911, %v799_v47  ;;  %v855_v38 = vsub.f32 0.0, %v799_v47 }
 0x30b   : > { %v1111_v0 = vadd.f32 1.0, %v1107_v54  ;;  %v2448_v6 = vand.u32 2147483647, %v2442_v57  ;;  %v764_v41 = vmul.f32 %v1923_v56, %v2295_v21  ;;  %v1163_v54 = vmul.f32 %v1159_v59, %v1103_v49 }
 0x30c   : > { %v807_v48 = vadd.f32 1.0, %v803_v22  ;;  %vm1098_vm8 = vcmp.lt.f32.partialorder %v2442_v57, 0.0 }
 0x30d   : > { %1930 = vrcp.f32 %v1111_v0  ;;  %v1110_v16 = vmul.f32 0.3275911, %v2448_v6  ;;  %v771_v19 = vmul.f32 %v2377_v25, %v764_v41 }
 0x30e   : > { %v1925_v20 = vpop.eup %1924  ;;  %1932 = vrsqrt.f32 %v1369_v13 }
 0x30f   : > { %v817_v23 = vmul.f32 1.0614054, %v1925_v20  ;;  %v2455_v60 = vadd.f32 %v2361_v11, %v771_v19  ;;  %v1114_v35 = vadd.f32 1.0, %v1110_v16  ;;  %1934 = vrcp.f32 %v807_v48 }
 0x310   : > { %1936 = vpow2.f32 %v862_v27  ;;  %v1364_v11 = vmul.f32 0.125, %v2389_v58  ;;  %v860_v58 = vmul.f32 1.442695, %v856_v45 }
 0x311   : > { %v821_v40 = vadd.f32 -1.4531521, %v817_v23  ;;  %v2461_v25 = vmul.f32 0.70710677, %v2455_v60  ;;  %1938 = vrcp.f32 %v1114_v35  ;;  %v1167_v23 = vmul.f32 1.442695, %v1163_v54 }
 0x312   : > { %v2457_v21 = vpop.eup %1926  ;;  %1940 = vpow2.f32 %v1169_v39  ;;  %v1368_v41 = vadd.f32 1e-06, %v1364_v11  ;;  %v859_v35 = vmul.f32 %v855_v38, %v799_v47 }
 0x313   : > { %v1124_v26 = vmul.f32 1.0614054, %v2457_v21  ;;  %v825_v42 = vmul.f32 %v1925_v20, %v821_v40  ;;  %v2465_v50 = vand.u32 2147483647, %v2461_v25  ;;  %vm790_vm7 = vcmp.lt.f32.partialorder %v2461_v25, 0.0 }
 0x314   : > { %v866_v54 = vmul.f32 1.442695, %v859_v35 }
 0x315   : > { %v1128_v46 = vadd.f32 -1.4531521, %v1124_v26  ;;  %v829_v4 = vadd.f32 1.4214138, %v825_v42  ;;  %v802_v62 = vmul.f32 0.3275911, %v2465_v50 }
 0x316   : > { %v2468_v9 = vpop.eup %1928  ;;  %v2479_v26 = vmul.f32 0.5, %v2396_v5 }
 0x317   : > { %v1132_v56 = vmul.f32 %v2457_v21, %v1128_v46  ;;  %v833_v0 = vmul.f32 %v1925_v20, %v829_v4  ;;  %v816_v43 = vmul.f32 1.0614054, %v2468_v9  ;;  %v806_v16 = vadd.f32 1.0, %v802_v62 }
 0x319   : > { %v1136_v13 = vadd.f32 1.4214138, %v1132_v56  ;;  %v837_v19 = vadd.f32 -0.28449672, %v833_v0  ;;  %v820_v22 = vadd.f32 -1.4531521, %v816_v43  ;;  %1942 = vrcp.f32 %v806_v16 }
 0x31a   : > { %v2473_v18 = vpop.eup %1930  ;;  %1944 = vpow2.f32 %v860_v58  ;;  %v854_v56 = vsub.f32 0.0, %v2465_v50  ;;  %v2076_v58 = vmov 1.0  }
 0x31b   : > { %v1140_v49 = vmul.f32 %v2457_v21, %v1136_v13  ;;  %v1123_v27 = vmul.f32 1.0614054, %v2473_v18  ;;  %v841_v31 = vmul.f32 %v1925_v20, %v837_v19  ;;  %v824_v48 = vmul.f32 %v2468_v9, %v820_v22  ;;  %v1933_v59 = vpop.eup %1932 }
 0x31c   : > { %1946 = vrsqrt.f32 %v1368_v41  ;;  %v2484_v52 = vpop.eup %1934  ;;  %v2489_v0 = vmul.f32 %v1933_v59, %v2252_v53  ;;  %v793_v38 = vsel %vm789_vm2, -1.0, %v2076_v58  ;;  %v1088_v13 = vmul.f32 0.5, %v2405_v15 }
 0x31d   : > { %v1144_v39 = vadd.f32 -0.28449672, %v1140_v49  ;;  %v1127_v40 = vadd.f32 -1.4531521, %v1123_v27  ;;  %1948 = vrsqrt.f32 %v1371_v61  ;;  %v845_v42 = vadd.f32 0.2548296, %v841_v31  ;;  %v1937_v62 = vpop.eup %1936 }
 0x31e   : > { %v828_v45 = vadd.f32 1.4214138, %v824_v48  ;;  %1950 = vpow2.f32 %v1167_v23  ;;  %v819_v43 = vmul.f32 1.0614054, %v2484_v52  ;;  %v2494_v16 = vpop.eup %1938  ;;  %v858_v27 = vmul.f32 %v854_v56, %v2465_v50 }
 0x31f   : > { %v1148_v11 = vmul.f32 %v2457_v21, %v1144_v39  ;;  %v1131_v46 = vmul.f32 %v2473_v18, %v1127_v40  ;;  %v849_v47 = vmul.f32 %v1925_v20, %v845_v42  ;;  %v1941_v22 = vpop.eup %1940  ;;  %1952 = vpow2.f32 %v866_v54  ;;  %v2508_v40 = vld [vmem:[%s2866_s5] sm:$0xff] }
 0x320   : > { %v832_v4 = vmul.f32 %v2468_v9, %v828_v45  ;;  %v823_v19 = vadd.f32 -1.4531521, %v819_v43  ;;  %v1100_v14 = vsel %vm1096_vm3, -1.0, %v2076_v58  ;;  %v1126_v39 = vmul.f32 1.0614054, %v2494_v16  ;;  %1844 = vmatprep.subr.mxu0 %v2508_v40  ;;  %1828 = vmatprep.subr.mxu1 %v2508_v40 }
 0x321   : > { %v1152_v5 = vadd.f32 0.2548296, %v1148_v11  ;;  %v1135_v12 = vadd.f32 1.4214138, %v1131_v46  ;;  %v869_v41 = vmul.f32 %v1937_v62, %v849_v47  ;;  %v780_v42 = vmul.f32 0.5, %v2416_v33  ;;  %1845 = vmatpush3.msra.mxu0 %v2508_v40  ;;  %1829 = vmatpush3.msra.mxu1 %v2508_v40 }
 0x322   : > { %v836_v20 = vadd.f32 -0.28449672, %v832_v4  ;;  %v827_v15 = vmul.f32 %v2484_v52, %v823_v19  ;;  %v792_v47 = vsel %vm788_vm4, -1.0, %v2076_v58  ;;  %v864_v54 = vmul.f32 1.442695, %v858_v27  ;;  %1836 = vmatprep.subr.mxu1 %v2508_v40 }
 0x323   : > { %v1156_v61 = vmul.f32 %v2457_v21, %v1152_v5  ;;  %v1139_v53 = vmul.f32 %v2473_v18, %v1135_v12  ;;  %v873_v23 = vsub.f32 1.0, %v869_v41  ;;  %v795_v1 = vsel %vm791_vm6, -1.0, %v2076_v58 }
 0x324   : > { %v840_v49 = vmul.f32 %v2468_v9, %v836_v20  ;;  %v831_v50 = vadd.f32 1.4214138, %v827_v15  ;;  %v1130_v20 = vadd.f32 -1.4531521, %v1126_v39  ;;  %1954 = vpow2.f32 %v864_v54 }
 0x325   : > { %v1176_v31 = vmul.f32 %v1941_v22, %v1156_v61  ;;  %v1143_v48 = vadd.f32 -0.28449672, %v1139_v53  ;;  %v877_v35 = vmul.f32 %v873_v23, %v793_v38  ;;  %vm1664_vm4 = vcmask 785408  }
 0x326   : > { %v844_v21 = vadd.f32 0.2548296, %v840_v49  ;;  %v2514_v11 = vpop.eup %1942  ;;  %v835_v5 = vmul.f32 %v2484_v52, %v831_v50  ;;  %v1134_v39 = vmul.f32 %v2494_v16, %v1130_v20 }
 0x327   : > { %v1180_v59 = vsub.f32 1.0, %v1176_v31  ;;  %v1147_v45 = vmul.f32 %v2473_v18, %v1143_v48  ;;  %v881_v46 = vadd.f32 1.0, %v877_v35  ;;  %v1945_v33 = vpop.eup %1944  ;;  %v818_v12 = vmul.f32 1.0614054, %v2514_v11 }
 0x328   : > { %v848_v4 = vmul.f32 %v2468_v9, %v844_v21  ;;  %v839_v53 = vadd.f32 -0.28449672, %v835_v5 }
 0x329   : > { %v425_v56 = vpop.xlane.xlu0 %424  ;;  %v1184_v62 = vmul.f32 %v1180_v59, %v1100_v14  ;;  %v1151_v43 = vadd.f32 0.2548296, %v1147_v45  ;;  %v1947_v38 = vpop.eup %1946  ;;  %v885_v41 = vmul.f32 %v881_v46, %v2479_v26  ;;  %v822_v23 = vadd.f32 -1.4531521, %v818_v12 }
 0x32a   : > { %v435_v37 = vmul.f32 0.125, %v425_v56  ;;  %v868_v9 = vmul.f32 %v1945_v33, %v848_v4  ;;  %v1949_v61 = vpop.eup %1948  ;;  %v843_v48 = vmul.f32 %v2484_v52, %v839_v53  ;;  %v1099_v33 = vsel %vm1095_vm5, -1.0, %v2076_v58 }
 0x32b   : > { %v1188_v19 = vadd.f32 1.0, %v1184_v62  ;;  %v1155_v22 = vmul.f32 %v2473_v18, %v1151_v43  ;;  %v1951_v49 = vpop.eup %1950  ;;  %894 = vrot.lane.b32.xlu0 %v885_v41, %s2071_s15  ;;  %v826_v35 = vmul.f32 %v2514_v11, %v822_v23  ;;  %v1376_v18 = vmul.f32 %v1947_v38, %v2270_v3 }
 0x32c   : > { %v439_v27 = vadd.f32 1e-06, %v435_v37  ;;  %v872_v31 = vsub.f32 1.0, %v868_v9  ;;  %v847_v50 = vadd.f32 0.2548296, %v843_v48  ;;  %v1379_v54 = vmul.f32 %v1949_v61, %v2289_v17  ;;  %v1953_v5 = vpop.eup %1952 }
 0x32d   : > { %v1192_v15 = vmul.f32 %v1188_v19, %v1088_v13  ;;  %v1175_v26 = vmul.f32 %v1951_v49, %v1155_v22  ;;  %v830_v46 = vadd.f32 1.4214138, %v826_v35  ;;  %v1162_v13 = vsub.f32 0.0, %v2448_v6  ;;  %v431_v17 = vpop.xlane.xlu0 %430 }
 0x32e   : > { %1956 = vrsqrt.f32 %v439_v27  ;;  %v1053_v14 = vpop.xlane.xlu1 %1052  ;;  %v876_v21 = vmul.f32 %v872_v31, %v792_v47  ;;  %v851_v3 = vmul.f32 %v2484_v52, %v847_v50  ;;  %v1384_v38 = vmul.f32 %v2384_v36, %v2489_v0 }
 0x32f   : > { %v1059_v59 = vmul.f32 0.125, %v1053_v14  ;;  %1201 = vrot.lane.b32.xlu1 %v1192_v15, %s2070_s14  ;;  %v1179_v45 = vsub.f32 1.0, %v1175_v26  ;;  %v834_v62 = vmul.f32 %v2514_v11, %v830_v46  ;;  %v1087_v37 = vmul.f32 0.5, %v2423_v10 }
 0x330   : > { %v880_v4 = vadd.f32 1.0, %v876_v21  ;;  %v1138_v41 = vadd.f32 1.4214138, %v1134_v39  ;;  %v871_v44 = vmul.f32 %v1953_v5, %v851_v3  ;;  %v1166_v52 = vmul.f32 %v1162_v13, %v2448_v6 }
 0x331   : > { %v1063_v47 = vadd.f32 1e-06, %v1059_v59  ;;  %v1183_v56 = vmul.f32 %v1179_v45, %v1099_v33  ;;  %v1383_v61 = vmul.f32 %v2384_v36, %v1376_v18  ;;  %v1386_v0 = vmul.f32 %v2384_v36, %v1379_v54  ;;  %v1955_v14 = vpop.eup %1954  ;;  %v434_v21 = vpop.xlane.xlu0 %433 }
 0x332   : > { %v1360_v43 = vpop.xlane.xlu1 %1359  ;;  %v884_v12 = vmul.f32 %v880_v4, %v780_v42  ;;  %v838_v42 = vadd.f32 -0.28449672, %v834_v62  ;;  %v875_v53 = vsub.f32 1.0, %v871_v44  ;;  %v783_v23 = vmul.f32 0.5, %v2439_v55 }
 0x333   : > { %v1366_v9 = vmul.f32 0.125, %v1360_v43  ;;  %v1187_v20 = vadd.f32 1.0, %v1183_v56  ;;  %1958 = vrsqrt.f32 %v1063_v47  ;;  %v1142_v6 = vmul.f32 %v2494_v16, %v1138_v41 }
 0x334   : > { %892 = vrot.lane.b32.xlu1 %v884_v12, %s2071_s15  ;;  %v842_v49 = vmul.f32 %v2514_v11, %v838_v42  ;;  %v1173_v48 = vmul.f32 1.442695, %v1166_v52  ;;  %v437_v55 = vmul.f32 0.125, %v431_v17  ;;  %v879_v26 = vmul.f32 %v875_v53, %v795_v1 }
 0x335   : > { %v1370_v19 = vadd.f32 1e-06, %v1366_v9  ;;  %v1191_v10 = vmul.f32 %v1187_v20, %v1087_v37  ;;  %v1146_v46 = vadd.f32 -0.28449672, %v1142_v6  ;;  %v438_v3 = vmul.f32 0.125, %v434_v21 }
 0x336   : > { %v2549_v22 = vpop.permute.xlu1 %1387  ;;  %v846_v35 = vadd.f32 0.2548296, %v842_v49  ;;  %v883_v50 = vadd.f32 1.0, %v879_v26  ;;  %v441_v47 = vadd.f32 1e-06, %v437_v55  ;;  %v782_v42 = vmul.f32 0.5, %v2455_v60 }
 0x337   : > { %1960 = vrsqrt.f32 %v1370_v19  ;;  %v2556_v27 = vadd.f32 %v2549_v22, %v1383_v61  ;;  %v2559_v31 = vadd.f32 %v2549_v22, %v1384_v38  ;;  %v2562_v15 = vadd.f32 %v2549_v22, %v1386_v0  ;;  %1199 = vrot.lane.b32.xlu0 %v1191_v10, %s2070_s14 }
 0x338   : > { %v850_v45 = vmul.f32 %v2514_v11, %v846_v35  ;;  %v887_v56 = vmul.f32 %v883_v50, %v783_v23  ;;  %1962 = vpow2.f32 %v1173_v48  ;;  %v794_v11 = vsel %vm790_vm7, -1.0, %v2076_v58 }
 0x339   : > { %v2566_v18 = vmul.f32 0.70710677, %v2556_v27  ;;  %v2569_v39 = vmul.f32 0.70710677, %v2559_v31  ;;  %v2572_v59 = vmul.f32 0.70710677, %v2562_v15  ;;  %v1150_v37 = vmul.f32 %v2494_v16, %v1146_v46 }
 0x33a   : > { %v870_v62 = vmul.f32 %v1955_v14, %v850_v45  ;;  %898 = vrot.lane.b32.xlu1 %v887_v56, %s2071_s15  ;;  %1964 = vrsqrt.f32 %v441_v47  ;;  %v442_v20 = vadd.f32 1e-06, %v438_v3 }
 0x33b   : > { %v1957_v13 = vpop.eup %1956  ;;  %v1410_v4 = vand.u32 2147483647, %v2566_v18  ;;  %v1411_v54 = vand.u32 2147483647, %v2569_v39  ;;  %v1413_v33 = vand.u32 2147483647, %v2572_v59 }
 0x33c   : > { %v874_v38 = vsub.f32 1.0, %v870_v62  ;;  %v447_v44 = vmul.f32 %v1957_v13, %v2351_v63  ;;  %v1154_v25 = vadd.f32 0.2548296, %v1150_v37  ;;  %vm1403_vm9 = vcmp.lt.f32.partialorder %v2569_v39, 0.0 }
 0x33d   : > { %v1414_v5 = vmul.f32 0.3275911, %v1410_v4  ;;  %v1415_v43 = vmul.f32 0.3275911, %v1411_v54  ;;  %v1417_v12 = vmul.f32 0.3275911, %v1413_v33 }
 0x33e   : > { %v878_v52 = vmul.f32 %v874_v38, %v794_v11  ;;  %v457_v0 = vmul.f32 %v2326_v34, %v447_v44  ;;  %v1466_v63 = vsub.f32 0.0, %v1410_v4  ;;  %v1467_v6 = vsub.f32 0.0, %v1411_v54 }
 0x33f   : > { %v1418_v41 = vadd.f32 1.0, %v1414_v5  ;;  %v1419_v17 = vadd.f32 1.0, %v1415_v43  ;;  %v1421_v9 = vadd.f32 1.0, %v1417_v12  ;;  %v1158_v55 = vmul.f32 %v2494_v16, %v1154_v25 }
 0x340   : > { %v1959_v61 = vpop.eup %1958  ;;  %v882_v19 = vadd.f32 1.0, %v878_v52  ;;  %v2590_v49 = vadd.f32 %v2310_v28, %v457_v0  ;;  %v1470_v14 = vmul.f32 %v1466_v63, %v1410_v4  ;;  %v1471_v50 = vmul.f32 %v1467_v6, %v1411_v54 }
 0x341   : > { %1966 = vrcp.f32 %v1418_v41  ;;  %v1071_v10 = vmul.f32 %v1959_v61, %v2313_v29  ;;  %v1469_v29 = vsub.f32 0.0, %v1413_v33  ;;  %vm1402_vm10 = vcmp.lt.f32.partialorder %v2566_v18, 0.0 }
 0x342   : > { %1968 = vrcp.f32 %v1419_v17  ;;  %v886_v1 = vmul.f32 %v882_v19, %v782_v42  ;;  %v2597_v26 = vmul.f32 0.70710677, %v2590_v49  ;;  %v1474_v4 = vmul.f32 1.442695, %v1470_v14 }
 0x343   : > { %1970 = vrcp.f32 %v1421_v9  ;;  %v1078_v48 = vmul.f32 %v2382_v30, %v1071_v10  ;;  %v1473_v13 = vmul.f32 %v1469_v29, %v1413_v33  ;;  %v1476_v54 = vmul.f32 1.442695, %v1471_v50 }
 0x344   : > { %v1961_v53 = vpop.eup %1960  ;;  %1972 = vrsqrt.f32 %v442_v20  ;;  %896 = vrot.lane.b32.xlu1 %v886_v1, %s2071_s15  ;;  %v487_v21 = vand.u32 2147483647, %v2597_v26  ;;  %v1102_v42 = vsel %vm1098_vm8, -1.0, %v2076_v58  ;;  %vm1405_vm11 = vcmp.lt.f32.partialorder %v2572_v59, 0.0  ;;  %s2815_s15 = scalar_lea.hbm %s2868_s7, %s1785_s9 }
 0x345   : > { %v1378_v23 = vmul.f32 %v1961_v53, %v2318_v32  ;;  %v2600_v32 = vadd.f32 %v2398_v7, %v1078_v48  ;;  %v1963_v30 = vpop.eup %1962  ;;  %v1480_v38 = vmul.f32 1.442695, %v1473_v13  ;;  %vm479_vm12 = vcmp.lt.f32.partialorder %v2597_v26, 0.0 }
 0x346   : > { %v1178_v45 = vmul.f32 %v1963_v30, %v1158_v55  ;;  %v491_v46 = vmul.f32 0.3275911, %v487_v21  ;;  %v543_v0 = vsub.f32 0.0, %v487_v21 }
 0x347   : > { %v1385_v60 = vmul.f32 %v2384_v36, %v1378_v23  ;;  %v2607_v36 = vmul.f32 0.70710677, %v2600_v32  ;;  %v1965_v47 = vpop.eup %1964 }
 0x348   : > { %v495_v3 = vadd.f32 1.0, %v491_v46  ;;  %v1182_v12 = vsub.f32 1.0, %v1178_v45  ;;  %v449_v17 = vmul.f32 %v1965_v47, %v2354_v2  ;;  %v2646_v46 = vmul.f32 0.5, %v2559_v31 }
 0x349   : > { %v2603_v35 = vadd.f32 %v2549_v22, %v1385_v60  ;;  %v2613_v7 = vand.u32 2147483647, %v2607_v36  ;;  %v547_v60 = vmul.f32 %v543_v0, %v487_v21  ;;  %vm1097_vm14 = vcmp.lt.f32.partialorder %v2607_v36, 0.0 }
 0x34a   : > { %1974 = vrcp.f32 %v495_v3  ;;  %v459_v2 = vmul.f32 %v2326_v34, %v449_v17  ;;  %v1186_v63 = vmul.f32 %v1182_v12, %v1102_v42 }
 0x34b   : > { %v2610_v16 = vmul.f32 0.70710677, %v2603_v35  ;;  %v1109_v62 = vmul.f32 0.3275911, %v2613_v7  ;;  %1976 = vpow2.f32 %v1474_v4  ;;  %v1161_v21 = vsub.f32 0.0, %v2613_v7 }
 0x34c   : > { %1978 = vpow2.f32 %v1476_v54  ;;  %v2639_v14 = vadd.f32 %v2310_v28, %v459_v2  ;;  %v551_v3 = vmul.f32 1.442695, %v547_v60 }
 0x34d   : > { %v1412_v22 = vand.u32 2147483647, %v2610_v16  ;;  %v1113_v41 = vadd.f32 1.0, %v1109_v62  ;;  %vm1404_vm13 = vcmp.lt.f32.partialorder %v2610_v16, 0.0 }
 0x34e   : > { %v2616_v56 = vpop.eup %1966 }
 0x34f   : > { %v2620_v5 = vpop.eup %1968  ;;  %v1416_v43 = vmul.f32 0.3275911, %v1412_v22  ;;  %v1430_v33 = vmul.f32 1.0614054, %v2616_v56  ;;  %v1468_v55 = vsub.f32 0.0, %v1412_v22 }
 0x350   : > { %v2623_v11 = vpop.eup %1970  ;;  %v1431_v37 = vmul.f32 1.0614054, %v2620_v5 }
 0x351   : > { %v1973_v9 = vpop.eup %1972  ;;  %v1420_v44 = vadd.f32 1.0, %v1416_v43  ;;  %v1434_v20 = vadd.f32 -1.4531521, %v1430_v33  ;;  %v1433_v52 = vmul.f32 1.0614054, %v2623_v11  ;;  %v1472_v54 = vmul.f32 %v1468_v55, %v1412_v22 }
 0x352   : > { %v1435_v61 = vadd.f32 -1.4531521, %v1431_v37  ;;  %v450_v10 = vmul.f32 %v1973_v9, %v2359_v8  ;;  %v2642_v8 = vadd.f32 1.0, %v1186_v63  ;;  %v2656_v43 = vmul.f32 0.70710677, %v2639_v14 }
 0x353   : > { %1980 = vrcp.f32 %v1420_v44  ;;  %v1438_v19 = vmul.f32 %v2616_v56, %v1434_v20  ;;  %v1437_v25 = vadd.f32 -1.4531521, %v1433_v52  ;;  %v1394_v33 = vmul.f32 0.5, %v2556_v27 }
 0x354   : > { %v1439_v53 = vmul.f32 %v2620_v5, %v1435_v61  ;;  %1982 = vrcp.f32 %v1113_v41  ;;  %v460_v30 = vmul.f32 %v2326_v34, %v450_v10  ;;  %v1407_v22 = vsel %vm1403_vm9, -1.0, %v2076_v58 }
 0x355   : > { %1984 = vpow2.f32 %v1480_v38  ;;  %v1442_v23 = vadd.f32 1.4214138, %v1438_v19  ;;  %v1441_v1 = vmul.f32 %v2623_v11, %v1437_v25  ;;  %v1406_v9 = vsel %vm1402_vm10, -1.0, %v2076_v58 }
 0x356   : > { %v1443_v6 = vadd.f32 1.4214138, %v1439_v53  ;;  %v2659_v31 = vadd.f32 %v2310_v28, %v460_v30  ;;  %v1165_v28 = vmul.f32 %v1161_v21, %v2613_v7  ;;  %1986 = vpow2.f32 %v551_v3 }
 0x357   : > { %v1446_v57 = vmul.f32 %v2616_v56, %v1442_v23  ;;  %v1445_v48 = vadd.f32 1.4214138, %v1441_v1  ;;  %v2652_v34 = vpop.eup %1974  ;;  %v1478_v42 = vmul.f32 1.442695, %v1472_v54  ;;  %v2676_v39 = vand.u32 2147483647, %v2656_v43 }
 0x358   : > { %v1447_v29 = vmul.f32 %v2620_v5, %v1443_v6  ;;  %v507_v37 = vmul.f32 1.0614054, %v2652_v34  ;;  %v1977_v41 = vpop.eup %1976  ;;  %v2679_v25 = vmul.f32 0.70710677, %v2659_v31  ;;  %v1171_v23 = vmul.f32 1.442695, %v1165_v28 }
 0x359   : > { %v1450_v50 = vadd.f32 -0.28449672, %v1446_v57  ;;  %v1449_v45 = vmul.f32 %v2623_v11, %v1445_v48  ;;  %v1979_v44 = vpop.eup %1978  ;;  %1988 = vpow2.f32 %v1478_v42  ;;  %v1409_v3 = vsel %vm1405_vm11, -1.0, %v2076_v58 }
 0x35a   : > { %v1451_v13 = vadd.f32 -0.28449672, %v1447_v29  ;;  %v511_v52 = vadd.f32 -1.4531521, %v507_v37  ;;  %1990 = vpow2.f32 %v1171_v23  ;;  %vm481_vm15 = vcmp.lt.f32.partialorder %v2656_v43, 0.0 }
 0x35b   : > { %v1454_v47 = vmul.f32 %v2616_v56, %v1450_v50  ;;  %v1453_v4 = vadd.f32 -0.28449672, %v1449_v45  ;;  %v493_v50 = vmul.f32 0.3275911, %v2676_v39  ;;  %vm482_vm3 = vcmp.lt.f32.partialorder %v2679_v25, 0.0 }
 0x35c   : > { %v1455_v62 = vmul.f32 %v2620_v5, %v1451_v13 }
 0x35d   : > { %v1458_v12 = vadd.f32 0.2548296, %v1454_v47  ;;  %v1457_v38 = vmul.f32 %v2623_v11, %v1453_v4  ;;  %v497_v28 = vadd.f32 1.0, %v493_v50 }
 0x35e   : > { %v1459_v17 = vadd.f32 0.2548296, %v1455_v62 }
 0x35f   : > { %v1462_v27 = vmul.f32 %v2616_v56, %v1458_v12  ;;  %v1461_v20 = vadd.f32 0.2548296, %v1457_v38  ;;  %v515_v56 = vmul.f32 %v2652_v34, %v511_v52 }
 0x360   : > { %v2672_v61 = vpop.eup %1980  ;;  %v1463_v19 = vmul.f32 %v2620_v5, %v1459_v17 }
 0x361   : > { %v2681_v18 = vpop.eup %1982  ;;  %v1482_v7 = vmul.f32 %v1977_v41, %v1462_v27  ;;  %v1465_v0 = vmul.f32 %v2623_v11, %v1461_v20  ;;  %v1432_v53 = vmul.f32 1.0614054, %v2672_v61  ;;  %v519_v6 = vadd.f32 1.4214138, %v515_v56 }
 0x362   : > { %v1985_v2 = vpop.eup %1984  ;;  %v1483_v10 = vmul.f32 %v1979_v44, %v1463_v19  ;;  %v1125_v5 = vmul.f32 1.0614054, %v2681_v18  ;;  %v2689_v11 = vand.u32 2147483647, %v2679_v25  ;;  %v473_v25 = vmul.f32 0.5, %v2639_v14 }
 0x363   : > { %v1486_v63 = vsub.f32 1.0, %v1482_v7  ;;  %v1485_v1 = vmul.f32 %v1985_v2, %v1465_v0  ;;  %v1436_v57 = vadd.f32 -1.4531521, %v1432_v53  ;;  %v523_v29 = vmul.f32 %v2652_v34, %v519_v6  ;;  %v1987_v19 = vpop.eup %1986 }
 0x364   : > { %v1487_v48 = vsub.f32 1.0, %v1483_v10  ;;  %v1129_v60 = vadd.f32 -1.4531521, %v1125_v5  ;;  %v494_v41 = vmul.f32 0.3275911, %v2689_v11 }
 0x365   : > { %v1490_v55 = vmul.f32 %v1486_v63, %v1406_v9  ;;  %v1440_v30 = vmul.f32 %v2672_v61, %v1436_v57  ;;  %v1489_v13 = vsub.f32 1.0, %v1485_v1  ;;  %v527_v54 = vadd.f32 -0.28449672, %v523_v29 }
 0x366   : > { %v1491_v45 = vmul.f32 %v1487_v48, %v1407_v22  ;;  %v1133_v21 = vmul.f32 %v2681_v18, %v1129_v60  ;;  %v498_v0 = vadd.f32 1.0, %v494_v41  ;;  %v1989_v1 = vpop.eup %1988  ;;  %v471_v29 = vmul.f32 0.5, %v2590_v49 }
 0x367   : > { %v428_v47 = vpop.xlane.xlu1 %427  ;;  %v1494_v4 = vadd.f32 1.0, %v1490_v55  ;;  %v1444_v62 = vadd.f32 1.4214138, %v1440_v30  ;;  %v531_v22 = vmul.f32 %v2652_v34, %v527_v54  ;;  %v1493_v20 = vmul.f32 %v1489_v13, %v1409_v3  ;;  %v1991_v60 = vpop.eup %1990 }
 0x368   : > { %v436_v12 = vmul.f32 0.125, %v428_v47  ;;  %v1495_v38 = vadd.f32 1.0, %v1491_v45  ;;  %v1137_v37 = vadd.f32 1.4214138, %v1133_v21  ;;  %v1408_v45 = vsel %vm1404_vm13, -1.0, %v2076_v58 }
 0x369   : > { %v1498_v17 = vmul.f32 %v1494_v4, %v1394_v33  ;;  %v1448_v9 = vmul.f32 %v2672_v61, %v1444_v62  ;;  %v535_v52 = vadd.f32 0.2548296, %v531_v22  ;;  %v1090_v33 = vmul.f32 0.5, %v2435_v51 }
 0x36a   : > { %v440_v44 = vadd.f32 1e-06, %v436_v12  ;;  %v1499_v27 = vmul.f32 %v1495_v38, %v2646_v46  ;;  %v1141_v59 = vmul.f32 %v2681_v18, %v1137_v37  ;;  %v1497_v2 = vadd.f32 1.0, %v1493_v20  ;;  %v2006_v38 = vld [vmem:[%s2864_s3] ss:$0 sm:$0xff] }
 0x36b   : > { %1506 = vrot.lane.b32.xlu0 %v1498_v17, %s2072_s16  ;;  %v1452_v42 = vadd.f32 -0.28449672, %v1448_v9  ;;  %v539_v56 = vmul.f32 %v2652_v34, %v535_v52  ;;  %v1194_v46 = vmul.f32 %v2642_v8, %v1090_v33  ;;  %v1397_v51 = vmul.f32 0.5, %v2562_v15 }
 0x36c   : > { %1992 = vrsqrt.f32 %v440_v44  ;;  %1508 = vrot.lane.b32.xlu1 %v1499_v27, %s2072_s16  ;;  %v1145_v7 = vadd.f32 -0.28449672, %v1141_v59  ;;  %v483_v8 = vsel %vm479_vm12, -1.0, %v2076_v58  ;;  %v1089_v3 = vmul.f32 0.5, %v2600_v32  ;;  %v2007_v32 = vld [vmem:[%s2865_s4] ss:$0 sm:$0xff] }
 0x36d   : > { %v1456_v53 = vmul.f32 %v2672_v61, %v1452_v42  ;;  %1994 = vrcp.f32 %v497_v28  ;;  %v559_v5 = vmul.f32 %v1987_v19, %v539_v56  ;;  %v1501_v57 = vmul.f32 %v1497_v2, %v1397_v51 }
 0x36e   : > { %v1149_v10 = vmul.f32 %v2681_v18, %v1145_v7  ;;  %1996 = vrcp.f32 %v498_v0  ;;  %v1396_v12 = vmul.f32 0.5, %v2603_v35  ;;  %v545_v42 = vsub.f32 0.0, %v2676_v39 }
 0x36f   : > { %v1460_v23 = vadd.f32 0.2548296, %v1456_v53  ;;  %v563_v34 = vsub.f32 1.0, %v559_v5  ;;  %v546_v7 = vsub.f32 0.0, %v2689_v11 }
 0x370   : > { %1205 = vrot.lane.b32.xlu1 %v1194_v46, %s2070_s14  ;;  %v1153_v63 = vadd.f32 0.2548296, %v1149_v10  ;;  %v549_v0 = vmul.f32 %v545_v42, %v2676_v39 }
 0x371   : > { %v1464_v6 = vmul.f32 %v2672_v61, %v1460_v23  ;;  %v567_v55 = vmul.f32 %v563_v34, %v483_v8  ;;  %v550_v2 = vmul.f32 %v546_v7, %v2689_v11 }
 0x372   : > { %v1157_v48 = vmul.f32 %v2681_v18, %v1153_v63  ;;  %v1101_v18 = vsel %vm1097_vm14, -1.0, %v2076_v58  ;;  %v555_v10 = vmul.f32 1.442695, %v549_v0 }
 0x373   : > { %v1484_v26 = vmul.f32 %v1989_v1, %v1464_v6  ;;  %v571_v30 = vadd.f32 1.0, %v567_v55  ;;  %v557_v63 = vmul.f32 1.442695, %v550_v2  ;;  %v2776_v2 = vld [vmem:[%s2867_s6] ss:$0 sm:$0xff] }
 0x374   : > { %1512 = vrot.lane.b32.xlu1 %v1501_v57, %s2072_s16  ;;  %v1177_v15 = vmul.f32 %v1991_v60, %v1157_v48 }
 0x375   : > { %v1488_v50 = vsub.f32 1.0, %v1484_v26  ;;  %v575_v13 = vmul.f32 %v571_v30, %v471_v29 }
 0x376   : > { %v1181_v61 = vsub.f32 1.0, %v1177_v15 }
 0x377   : > { %v1492_v21 = vmul.f32 %v1488_v50, %v1408_v45  ;;  %1830 = vmatprep.mubr.msk.f32.mxu1 %vm397_vm1, %v575_v13 }
 0x378   : > { %v1185_v47 = vmul.f32 %v1181_v61, %v1101_v18 }
 0x379   : > { %v1993_v4 = vpop.eup %1992  ;;  %v1496_v54 = vadd.f32 1.0, %v1492_v21 }
 0x37a   : > { %v1995_v16 = vpop.eup %1994  ;;  %v1189_v36 = vadd.f32 1.0, %v1185_v47  ;;  %v448_v49 = vmul.f32 %v1993_v4, %v2375_v24 }
 0x37b   : > { %v1997_v41 = vpop.eup %1996  ;;  %v509_v17 = vmul.f32 1.0614054, %v1995_v16  ;;  %v1500_v22 = vmul.f32 %v1496_v54, %v1396_v12 }
 0x37c   : > { %v1193_v62 = vmul.f32 %v1189_v36, %v1089_v3  ;;  %v458_v37 = vmul.f32 %v2006_v38, %v448_v49  ;;  %v510_v35 = vmul.f32 1.0614054, %v1997_v41  ;;  %v485_v49 = vsel %vm481_vm15, -1.0, %v2076_v58 }
 0x37d   : > { %v513_v28 = vadd.f32 -1.4531521, %v509_v17  ;;  %v486_v17 = vsel %vm482_vm3, -1.0, %v2076_v58 }
 0x37e   : > { %1203 = vrot.lane.b32.xlu0 %v1193_v62, %s2070_s14  ;;  %v2733_v9 = vadd.f32 %v2007_v32, %v458_v37  ;;  %v514_v20 = vadd.f32 -1.4531521, %v510_v35  ;;  %s2008_s14 = scalar_lea.vmem %s2808_s8, 512 }
 0x37f   : > { %v517_v59 = vmul.f32 %v1995_v16, %v513_v28  ;;  %p2009_p11 = scmp.ne.s32.totalorder %s2808_s8, %s2008_s14 }
 0x380   : > { %v2736_v24 = vmul.f32 0.70710677, %v2733_v9  ;;  %v518_v19 = vmul.f32 %v1997_v41, %v514_v20 }
 0x381   : > { %v521_v33 = vadd.f32 1.4214138, %v517_v59  ;;  %p2010_p12 = pnand %p2009_p11, %p2160_p5 }
 0x382   : > { %1510 = vrot.lane.b32.xlu0 %v1500_v22, %s2072_s16  ;;  %v488_v44 = vand.u32 2147483647, %v2736_v24  ;;  %v522_v56 = vadd.f32 1.4214138, %v518_v19  ;;  %vm480_vm2 = vcmp.lt.f32.partialorder %v2736_v24, 0.0  ;;  %v472_v24 = vmul.f32 0.5, %v2733_v9 }
 0x383   : > { %v525_v53 = vmul.f32 %v1995_v16, %v521_v33  ;;  %v484_v43 = vsel %vm480_vm2, -1.0, %v2076_v58  ;;  %p2011_p13 = pneg %p2010_p12  ;;  %s2080_s16 = smov [#allocation2]  }
 0x384   : > { %v492_v27 = vmul.f32 0.3275911, %v488_v44  ;;  %v544_v46 = vsub.f32 0.0, %v488_v44  ;;  %v526_v5 = vmul.f32 %v1997_v41, %v522_v56 }
 0x385   : > { %v529_v23 = vadd.f32 -0.28449672, %v525_v53 }
 0x386   : > { %v496_v52 = vadd.f32 1.0, %v492_v27  ;;  %v548_v51 = vmul.f32 %v544_v46, %v488_v44  ;;  %v530_v1 = vadd.f32 -0.28449672, %v526_v5 }
 0x387   : > { %v533_v6 = vmul.f32 %v1995_v16, %v529_v23 }
 0x388   : > { %1998 = vrcp.f32 %v496_v52  ;;  %v553_v8 = vmul.f32 1.442695, %v548_v51  ;;  %v534_v60 = vmul.f32 %v1997_v41, %v530_v1  ;;  %v474_v52 = vmul.f32 0.5, %v2659_v31 }
 0x389   : > { %2000 = vpow2.f32 %v555_v10  ;;  %v537_v39 = vadd.f32 0.2548296, %v533_v6 }
 0x38a   : > { %2002 = vpow2.f32 %v557_v63  ;;  %v538_v15 = vadd.f32 0.2548296, %v534_v60 }
 0x38b   : > { %2004 = vpow2.f32 %v553_v8  ;;  %v541_v11 = vmul.f32 %v1995_v16, %v537_v39 }
 0x38c   : > { %v542_v61 = vmul.f32 %v1997_v41, %v538_v15 }
 0x395   : > { %v1999_v34 = vpop.eup %1998 }
 0x396   : > { %v508_v57 = vmul.f32 1.0614054, %v1999_v34  ;;  %v2001_v30 = vpop.eup %2000 }
 0x397   : > { %v561_v45 = vmul.f32 %v2001_v30, %v541_v11  ;;  %v2003_v18 = vpop.eup %2002 }
 0x398   : > { %v512_v48 = vadd.f32 -1.4531521, %v508_v57  ;;  %v562_v47 = vmul.f32 %v2003_v18, %v542_v61  ;;  %v2005_v54 = vpop.eup %2004 }
 0x399   : > { %v565_v3 = vsub.f32 1.0, %v561_v45 }
 0x39a   : > { %v516_v55 = vmul.f32 %v1999_v34, %v512_v48  ;;  %v566_v62 = vsub.f32 1.0, %v562_v47 }
 0x39b   : > { %v569_v38 = vmul.f32 %v565_v3, %v485_v49 }
 0x39c   : > { %v520_v26 = vadd.f32 1.4214138, %v516_v55  ;;  %v570_v32 = vmul.f32 %v566_v62, %v486_v17 }
 0x39d   : > { %v895_v4 = vpop.permute.xlu0 %894  ;;  %v573_v35 = vadd.f32 1.0, %v569_v38 }
 0x39e   : > { %v524_v29 = vmul.f32 %v1999_v34, %v520_v26  ;;  %v574_v20 = vadd.f32 1.0, %v570_v32 }
 0x39f   : > { %v577_v59 = vmul.f32 %v573_v35, %v473_v25 }
 0x3a0   : > { %v528_v50 = vadd.f32 -0.28449672, %v524_v29  ;;  %v578_v58 = vmul.f32 %v574_v20, %v474_v52 }
 0x3a1   : > { %v1202_v37 = vpop.permute.xlu1 %1201 }
 0x3a2   : > { %v532_v13 = vmul.f32 %v1999_v34, %v528_v50 }
 0x3a4   : > { %v536_v21 = vadd.f32 0.2548296, %v532_v13 }
 0x3a6   : > { %v540_v36 = vmul.f32 %v1999_v34, %v536_v21  ;;  %v893_v44 = vpop.permute.xlu1 %892 }
 0x3a8   : > { %v560_v16 = vmul.f32 %v2005_v54, %v540_v36 }
 0x3a9   : > { %v1200_v12 = vpop.permute.xlu0 %1199 }
 0x3aa   : > { %1846 = vmatprep.mubr.msk.f32.mxu0 %vm397_vm1, %v1200_v12  ;;  %v564_v41 = vsub.f32 1.0, %v560_v16 }
 0x3ab   : > { %1847 = vmatmul.mubr.msk.f32.vlgmr.msra.gmra.mxu0 %vm397_vm1, %v1202_v37 }
 0x3ac   : > { %v568_v22 = vmul.f32 %v564_v41, %v484_v43  ;;  %v899_v42 = vpop.permute.xlu1 %898 }
 0x3ae   : > { %v572_v28 = vadd.f32 1.0, %v568_v22 }
 0x3b0   : > { %v576_v27 = vmul.f32 %v572_v28, %v472_v24 }
 0x3b2   : > { %1831 = vmatmul.mubr.msk.f32.vlgmr.msra.gmra.mxu1 %vm397_vm1, %v576_v27 }
 0x3b3   : > { %1833 = vmatprep.mubr.msk.f32.mxu1 %vm397_vm1, %v577_v59  ;;  %1837 = vmatpush3.msra.mxu1 %v2508_v40 }
 0x3b4   : > { %1852 = vmatprep.subr.mxu1 %v2508_v40 }
 0x3b6   : > { %1834 = vmatmul.mubr.msk.f32.gmra.mxu1 %vm397_vm1, %v578_v58  ;;  %v897_v14 = vpop.permute.xlu1 %896 }
 0x3b7   : > { %1838 = vmatprep.mubr.msk.f32.mxu1 %vm397_vm1, %v893_v44 }
 0x3ba   : > { %1839 = vmatmul.mubr.msk.f32.vlgmr.msra.gmra.mxu1 %vm397_vm1, %v895_v4 }
 0x3bb   : > { %1841 = vmatprep.mubr.msk.f32.mxu1 %vm397_vm1, %v897_v14  ;;  %1853 = vmatpush3.msra.mxu1 %v2508_v40 }
 0x3be   : > { %1842 = vmatmul.mubr.msk.f32.gmra.mxu1 %vm397_vm1, %v899_v42 }
 0x3dd   : > { %v1507_v31 = vpop.permute.xlu0 %1506 }
 0x3de   : > { %v1509_v9 = vpop.permute.xlu1 %1508  ;;  %1854 = vmatprep.mubr.msk.f32.mxu1 %vm397_vm1, %v1507_v31 }
 0x3df   : > { %1855 = vmatmul.mubr.msk.f32.vlgmr.msra.gmra.mxu1 %vm397_vm1, %v1509_v9 }
 0x3e2   : > { %v1206_v19 = vpop.permute.xlu1 %1205 }
 0x3e6   : > { %v1513_v0 = vpop.permute.xlu1 %1512 }
 0x3f0   : > { %v1204_v33 = vpop.permute.xlu0 %1203 }
 0x3f1   : > { %1849 = vmatprep.mubr.msk.f32.mxu0 %vm397_vm1, %v1204_v33 }
 0x3f2   : > { %1850 = vmatmul.mubr.msk.f32.gmra.mxu0 %vm397_vm1, %v1206_v19 }
 0x3f4   : > { %v1511_v7 = vpop.permute.xlu0 %1510 }
 0x3f5   : > { %1857 = vmatprep.mubr.msk.f32.mxu1 %vm397_vm1, %v1511_v7 }
 0x3f6   : > { %1858 = vmatmul.mubr.msk.f32.gmra.mxu1 %vm397_vm1, %v1513_v0  ;;  %vm1659_vm1 = vcmask 523264  }
 0x46b   : > { %v1848_v10 = vpop.f32.mrf.mxu0 }
 0x46c   : > { %v1287_v6 = vadd.f32 %v1848_v10, %v2776_v2 }
 0x46d   : > { %v1281_v1 = vpop.f32.mrf.mxu0 }
 0x46e   : > { %v1282_v57 = vadd.f32 %v2776_v2, %v1281_v1 }
 0x472   : > { %v1832_v40 = vpop.f32.mrf.mxu1 }
 0x473   : > { %v669_v16 = vadd.f32 %v1832_v40, %v2776_v2 }
 0x474   : > { %v663_v56 = vpop.f32.mrf.mxu1 }
 0x475   : > { %v664_v12 = vadd.f32 %v2776_v2, %v663_v56 }
 0x476   : > { %v1835_v53 = vpop.f32.mrf.mxu1 }
 0x477   : > { %v679_v43 = vadd.f32 %v1835_v53, %v2776_v2 }
 0x478   : > { %v2771_v46 = vpop.f32.mrf.mxu1 }
 0x479   : > { %v674_v24 = vadd.f32 %v2776_v2, %v2771_v46 }
 0x47a   : > { %v1840_v5 = vpop.f32.mrf.mxu1 }
 0x47b   : > { %v980_v23 = vadd.f32 %v1840_v5, %v2776_v2 }
 0x47c   : > { %v974_v51 = vpop.f32.mrf.mxu1 }
 0x47d   : > { %v975_v63 = vadd.f32 %v2776_v2, %v974_v51  ;;  %1613 = vrot.lane.b32.xlu1 %v980_v23, %s2077_s18 }
 0x47e   : > { %v1843_v34 = vpop.f32.mrf.mxu1 }
 0x47f   : > { %1611 = vrot.lane.b32.xlu0 %v975_v63, %s2077_s18  ;;  %v990_v48 = vadd.f32 %v1843_v34, %v2776_v2 }
 0x480   : > { %v984_v8 = vpop.f32.mrf.mxu1 }
 0x481   : > { %1629 = vrot.lane.b32.xlu1 %v1287_v6, %s2078_s20  ;;  %v985_v60 = vadd.f32 %v2776_v2, %v984_v8 }
 0x483   : > { %1627 = vrot.lane.b32.xlu0 %v1282_v57, %s2078_s20 }
 0x485   : > { %1617 = vrot.lane.b32.xlu1 %v990_v48, %s2077_s18 }
 0x487   : > { %1615 = vrot.lane.b32.xlu0 %v985_v60, %s2077_s18  ;;  %s2012_s18 = sshll.u32 %s2080_s16, 4  ;;  %s2013_s18 = int_to_ptr.vmem [resolvable:$false] %s2012_s18 }
 0x488   : > { %p2015_p0 = scmp.lt.s32.totalorder %s2808_s8, %s2013_s18 }
 0x49f   : > { %v1856_v39 = vpop.f32.mrf.mxu1 }
 0x4a0   : > { %v1594_v50 = vadd.f32 %v1856_v39, %v2776_v2 }
 0x4a1   : > { %v1588_v15 = vpop.f32.mrf.mxu1 }
 0x4a2   : > { %v1589_v61 = vadd.f32 %v2776_v2, %v1588_v15 }
 0x4b2   : > { %v1851_v55 = vpop.f32.mrf.mxu0 }
 0x4b3   : > { %v1297_v26 = vadd.f32 %v1851_v55, %v2776_v2 }
 0x4b4   : > { %v1291_v11 = vpop.f32.mrf.mxu0 }
 0x4b5   : > { %v1292_v29 = vadd.f32 %v2776_v2, %v1291_v11  ;;  %1633 = vrot.lane.b32.xlu1 %v1297_v26, %s2078_s20 }
 0x4b6   : > { %v1859_v30 = vpop.f32.mrf.mxu1 }
 0x4b7   : > { %1631 = vrot.lane.b32.xlu0 %v1292_v29, %s2078_s20  ;;  %v1604_v13 = vadd.f32 %v1859_v30, %v2776_v2  ;;  %s2014_s20 = scalar_lea.vmem %s2013_s18, 1024 }
 0x4b8   : > { %v1598_v45 = vpop.f32.mrf.mxu1  ;;  %p2016_p1 = scmp.lt.s32.totalorder %s2014_s20, %s2008_s14 }
 0x4b9   : > { %1645 = vrot.lane.b32.xlu1 %v1594_v50, %s2079_s21  ;;  %v1599_v18 = vadd.f32 %v2776_v2, %v1598_v45 }
 0x4ba   : > { %p2017_p2 = por %p2016_p1, %p2015_p0 }
 0x4bb   : > { %1643 = vrot.lane.b32.xlu0 %v1589_v61, %s2079_s21 }
 0x4bc   : > { %p2018_p3 = pnand %p2017_p2, %p2011_p13 }
 0x4bd   : > { %1649 = vrot.lane.b32.xlu1 %v1604_v13, %s2079_s21 }
 0x4bf   : > { %1647 = vrot.lane.b32.xlu0 %v1599_v18, %s2079_s21 }
 0x4ef   : > { %v1614_v21 = vpop.permute.xlu1 %1613 }
 0x4f0   : > { %v1656_v38 = vsel %vm299_vm0, %v669_v16, %v1614_v21 }
 0x4f1   : > { %v1612_v47 = vpop.permute.xlu0 %1611 }
 0x4f2   : > { %v1655_v17 = vsel %vm299_vm0, %v664_v12, %v1612_v47 }
 0x4f3   : > { %v1630_v4 = vpop.permute.xlu1 %1629 }
 0x4f4   : > { %v1661_v37 = vsel %vm1659_vm1, %v1656_v38, %v1630_v4 }
 0x4f5   : > { %v1628_v3 = vpop.permute.xlu0 %1627 }
 0x4f6   : > { %v1660_v32 = vsel %vm1659_vm1, %v1655_v17, %v1628_v3 }
 0x4f7   : > { %v1618_v36 = vpop.permute.xlu1 %1617 }
 0x4f8   : > { %v1658_v28 = vsel %vm299_vm0, %v679_v43, %v1618_v36 }
 0x4f9   : > { %v1616_v54 = vpop.permute.xlu0 %1615 }
 0x4fa   : > { %v1657_v20 = vsel %vm299_vm0, %v674_v24, %v1616_v54 }
 0x527   : > { %v1634_v49 = vpop.permute.xlu1 %1633 }
 0x528   : > { %v1663_v44 = vsel %vm1659_vm1, %v1658_v28, %v1634_v49 }
 0x529   : > { %v1632_v62 = vpop.permute.xlu0 %1631 }
 0x52a   : > { %v1662_v52 = vsel %vm1659_vm1, %v1657_v20, %v1632_v62 }
 0x52b   : > { %v1646_v41 = vpop.permute.xlu1 %1645 }
 0x52c   : > { %v1666_v22 = vsel %vm1664_vm4, %v1661_v37, %v1646_v41 }
 0x52d   : > { %1670 = vst [vmem:[%s272_s29 + $0x8] sm:$0xff] %v1666_v22  ;;  %v1644_v35 = vpop.permute.xlu0 %1643 }
 0x52e   : > { %v1665_v25 = vsel %vm1664_vm4, %v1660_v32, %v1644_v35 }
 0x52f   : > { %1669 = vst [vmem:[%s272_s29] sm:$0xff] %v1665_v25  ;;  %v1650_v27 = vpop.permute.xlu1 %1649 }
 0x530   : > { %v1668_v59 = vsel %vm1664_vm4, %v1663_v44, %v1650_v27 }
 0x531   : > { %1672 = vst [vmem:[%s272_s29 + $0x18] sm:$0xff] %v1668_v59  ;;  %v1648_v58 = vpop.permute.xlu0 %1647 }
 0x532   : > { %v1667_v42 = vsel %vm1664_vm4, %v1662_v52, %v1648_v58 }
 0x533   : > { %1671 = vst [vmem:[%s272_s29 + $0x10] sm:$0xff] %v1667_v42 }
 0x534   : > { %2021 = shalt.err (!%p2018_p3)
}
 0x535   : > { %s2022_s21 = scalar_lea.hbm %s2815_s15, 512  ;;  %s2026_s29 = scalar_lea.hbm %s2868_s7, 2048 }
 0x536   : > { %p2023_p4 = scmp.ne.s32.totalorder %s2815_s15, %s2022_s21  ;;  %p2027_p9 = scmp.lt.s32.totalorder %s2815_s15, %s2868_s7 }
 0x537   : > { %p2028_p10 = scmp.lt.s32.totalorder %s2026_s29, %s2022_s21 }
 0x538   : > { %p2024_p7 = pnand %p2023_p4, %p2160_p5 }
 0x539   : > { %p2029_p11 = por %p2028_p10, %p2027_p9 }
 0x53a   : > { %p2025_p8 = pneg %p2024_p7 }
 0x53c   : > { %p2030_p12 = pnand %p2029_p11, %p2025_p8 }
 0x53e   : > { %2033 = shalt.err (!%p2030_p12)
}
 0x53f   : > { %s2081_s28 = smov 128  }
 0x540   : > { %1860 = dma.vmem_to_hbm [thread:$0]  (%p2160_p5), %s2808_s8, 512, %s2815_s15, %s2820_s17, %s2081_s28, %s2081_s28, %s2073_s19  }
 0x541 PF: > { %p1866_p13 = scmp.ge.s32.totalorder %s2068_s27, 2  ;;  %s1702_s14 = sand.u32 1, %s2056_s24  }
 0x542   : > { %s1703_s16 = scalar_lea.sflag [#allocation3], %s1702_s14 }
 0x543   : > { %p1863_p0 = pnand %p1866_p13, %p2164_p6 }
 0x545   : > { %p1864_p1 = pneg %p1863_p0 }
 0x547   : > { %2051 = dma.done.wait (%p1864_p1), %s1703_s16, 512  }
 0x548   : > { %2053 = vsyncadd (%p1864_p1), %s1703_s16, 4294966784  ;;  %p17_p2 = scmp.ge.s32.totalorder %s2147_s30, 6   ;;  %s2871_s24 = smov %s2060_s25 }
 0x549   : > { %s2872_s25 = smov %s2064_s26  ;;  %s2873_s26 = smov %s2158_s10 }
 0x54a   : > { %s2874_s27 = smov %s2147_s30  ;;  %19 = sbr.rel (!%p17_p2) target bundleno = 3 (0x3), region = 83 }
 0x54f   :  { %1708 = vsyncpa [#allocation3], 1 }
 0x550   :  { %1710 = vsyncpa [#allocation3 + $0x1], 1 }

</bundles_post_ra>
